<compile_context>
chip_gen: v7x
topology: tpu7x:2x2x1
jax: 0.10.0
libtpu: 0.0.40
codegen_flags: <defaults>
</compile_context>

<pallas_src>
import math

import jax
import jax.numpy as jnp
from jax.experimental import pallas as pl
from jax.experimental.pallas import tpu as pltpu

NODES = 16
D_MODEL = 2 * NODES          # 32
D_K = 16
D_V = 16
N_HEADS = 1
D_FF = 256
SEQ_R = 8                    # data.r (sequence length), small test size
BATCH = 2
LN_EPS = 1e-5
NEG_INF = -1e9               # masked_fill_ value used by the reference


def _layernorm(y):
    # fresh nn.LayerNorm(d_model): weight=1, bias=0, eps=1e-5
    mean = jnp.mean(y, axis=-1, keepdims=True)
    var = jnp.mean((y - mean) ** 2, axis=-1, keepdims=True)
    return (y - mean) * jax.lax.rsqrt(var + LN_EPS)


# ----------------------------------------------------------------------------
# Single fused kernel: entire Decoder forward for one batch element/grid step.
# ----------------------------------------------------------------------------
def decoder_layer_kernel(dec_ref, enc_in_ref, enc_out_ref, link_ref, pe_ref,
                         wh_ref, bh_ref, wp_ref,
                         wqkv_s_ref, wfc_s_ref,
                         wq_e_ref, wkv_e_ref, wfc_e_ref,
                         w1_ref, w2_ref, scal_ref,
                         out_ref, sattn_ref, eattn_ref):
    dec_in = dec_ref[0]                       # (r, d_model) raw decoder inputs
    enc_in = enc_in_ref[0]                    # (r, d_model) raw encoder inputs
    enc_kv = enc_out_ref[0]                   # (r, d_model) encoder outputs
    link = link_ref[0]                        # (r, r) link similarity matrix
    r = dec_in.shape[0]

    # scalar parameters (SMEM)
    cw_s = scal_ref[0]                        # self-attn sim_conv weight
    cb_s = scal_ref[1]                        # self-attn sim_conv bias
    cw_e = scal_ref[2]                        # enc-attn sim_conv weight
    cb_e = scal_ref[3]                        # enc-attn sim_conv bias
    bp = scal_ref[4]                          # DimChange predict bias

    # --- PositionalEncoding ---
    # TODO(synk): nn.Dropout(p=0.1) in PositionalEncoding treated as identity (eval mode).
    x = dec_in + pe_ref[...]

    # --- DimChange pad values; key index lands in the LANE dim via NT matmul ---
    # dimc(v) = (v @ Wh + bh) @ wp + bp  (both layers are linear, no activation)
    def dimc_key_row(seq):
        h = jnp.dot(seq, wh_ref[...], preferred_element_type=jnp.float32) + bh_ref[...]
        v = jax.lax.dot_general(wp_ref[...], h, (((1,), (1,)), ((), ())),
                                preferred_element_type=jnp.float32)      # (1, r)
        return v + bp

    dec_pad = (dimc_key_row(dec_in) == 0.0).astype(jnp.float32)          # (1, r)
    enc_pad = (dimc_key_row(enc_in) == 0.0).astype(jnp.float32)          # (1, r)

    row = jax.lax.broadcasted_iota(jnp.int32, (r, r), 0)
    col = jax.lax.broadcasted_iota(jnp.int32, (r, r), 1)
    subseq = (col > row).astype(jnp.float32)                             # strict upper-tri
    self_mask = dec_pad + subseq                                         # >0 => masked
    enc_mask = jnp.broadcast_to(enc_pad, (r, r))                         # >0 => masked

    scale = 1.0 / math.sqrt(D_K)

    def attention(q, k, v, mask, cw, cb, wfc):
        # scores = Q K^T / sqrt(d_k) + sim_conv(link)
        scores = jax.lax.dot_general(q, k, (((1,), (1,)), ((), ())),
                                     preferred_element_type=jnp.float32) * scale
        scores = scores + (link * cw + cb)
        scores = jnp.where(mask > 0.0, jnp.float32(NEG_INF), scores)
        m = jnp.max(scores, axis=-1, keepdims=True)
        e = jnp.exp(scores - m)
        attn = e * pl.reciprocal(jnp.sum(e, axis=-1, keepdims=True), approx=True)
        ctx = jnp.dot(attn, v, preferred_element_type=jnp.float32)       # (r, d_v)
        out = jnp.dot(ctx, wfc, preferred_element_type=jnp.float32)      # (r, d_model)
        return out, attn

    # --- masked self-attention (fused QKV projection, n_heads = 1) ---
    qkv = jnp.dot(x, wqkv_s_ref[...], preferred_element_type=jnp.float32)  # (r, 3*d_k)
    o1, attn_s = attention(qkv[:, :D_K], qkv[:, D_K:2 * D_K], qkv[:, 2 * D_K:],
                           self_mask, cw_s, cb_s, wfc_s_ref[...])
    x1 = _layernorm(o1 + x)

    # --- encoder-decoder attention (fused KV projection) ---
    q2 = jnp.dot(x1, wq_e_ref[...], preferred_element_type=jnp.float32)       # (r, d_k)
    kv2 = jnp.dot(enc_kv, wkv_e_ref[...], preferred_element_type=jnp.float32)  # (r, 2*d_k)
    o2, attn_e = attention(q2, kv2[:, :D_K], kv2[:, D_K:],
                           enc_mask, cw_e, cb_e, wfc_e_ref[...])
    x2 = _layernorm(o2 + x1)

    # --- position-wise feed-forward ---
    h = jnp.maximum(jnp.dot(x2, w1_ref[...], preferred_element_type=jnp.float32), 0.0)
    y = jnp.dot(h, w2_ref[...], preferred_element_type=jnp.float32) + x2

    out_ref[0] = _layernorm(y)
    sattn_ref[0] = attn_s
    eattn_ref[0] = attn_e


# ----------------------------------------------------------------------------
# Wrapper / parameters.
# ----------------------------------------------------------------------------
def positional_encoding_table(max_len, d_model):
    pos = jnp.arange(max_len, dtype=jnp.float32)[:, None]
    div = jnp.exp(jnp.arange(0, d_model, 2, dtype=jnp.float32)
                  * (-math.log(10000.0) / d_model))
    pe = jnp.zeros((max_len, d_model), jnp.float32)
    pe = pe.at[:, 0::2].set(jnp.sin(pos * div))
    pe = pe.at[:, 1::2].set(jnp.cos(pos * div))
    return pe


@jax.jit
def decoder_forward(params, dec_inputs, enc_inputs, enc_outputs, link_sim_mat):
    Bn, r, d = dec_inputs.shape
    assert len(params['layers']) == 1        # n_layers = 1 (fully fused kernel)
    lp = params['layers'][0]
    wh, bh, wp_t, bp = params['dimc']
    wqkv_s, wfc_s, cw_s, cb_s = lp['self_attn']
    wq_e, wkv_e, wfc_e, cw_e, cb_e = lp['enc_attn']
    w1, w2 = lp['ffn']

    pe = positional_encoding_table(r, d)
    scalars = jnp.stack([cw_s, cb_s, cw_e, cb_e, bp]).astype(jnp.float32)  # -> SMEM

    def rep(shape):
        nd = len(shape)
        return pl.BlockSpec(shape, lambda b, _nd=nd: (0,) * _nd)

    def batched(s1, s2):
        return pl.BlockSpec((1, s1, s2), lambda b: (b, 0, 0))

    in_specs = [
        batched(r, d),                          # dec_inputs
        batched(r, d),                          # enc_inputs
        batched(r, d),                          # enc_outputs
        batched(r, r),                          # link_sim_mat
        rep((r, d)),                            # positional encoding table
        rep((d, NODES)),                        # dimc hidden weight (in x out)
        rep((1, NODES)),                        # dimc hidden bias
        rep((1, NODES)),                        # dimc predict weight (PyTorch (1, nodes))
        rep((d, 3 * D_K * N_HEADS)),            # self-attn fused W_QKV
        rep((D_V * N_HEADS, d)),                # self-attn fc
        rep((d, D_K * N_HEADS)),                # enc-attn W_Q
        rep((d, 2 * D_K * N_HEADS)),            # enc-attn fused W_KV
        rep((D_V * N_HEADS, d)),                # enc-attn fc
        rep((d, D_FF)),                         # ffn w1
        rep((D_FF, d)),                         # ffn w2
        pl.BlockSpec(memory_space=pltpu.MemorySpace.SMEM),   # scalar params
    ]
    out_specs = (
        pl.BlockSpec((1, r, d), lambda b: (b, 0, 0)),
        pl.BlockSpec((1, r, r), lambda b: (b, 0, 0)),
        pl.BlockSpec((1, r, r), lambda b: (b, 0, 0)),
    )
    out_shape = (
        jax.ShapeDtypeStruct((Bn, r, d), jnp.float32),
        jax.ShapeDtypeStruct((Bn, r, r), jnp.float32),
        jax.ShapeDtypeStruct((Bn, r, r), jnp.float32),
    )

    dec_out, self_attn, enc_attn = pl.pallas_call(
        decoder_layer_kernel,
        out_shape=out_shape,
        grid=(Bn,),
        in_specs=in_specs,
        out_specs=out_specs,
        compiler_params=pltpu.CompilerParams(
            dimension_semantics=("parallel",)),    # batch shards across TCs on v7x
    )(dec_inputs, enc_inputs, enc_outputs, link_sim_mat, pe,
      wh, bh, wp_t, wqkv_s, wfc_s, wq_e, wkv_e, wfc_e, w1, w2, scalars)

    # match the PyTorch return structure: lists of [B, n_heads, r, r]
    return dec_out, [self_attn[:, None]], [enc_attn[:, None]]


def init_params(key):
    def unif(k, shape, fan_in):
        bound = 1.0 / math.sqrt(fan_in)
        return jax.random.uniform(k, shape, jnp.float32, -bound, bound)

    ks = jax.random.split(key, 18)
    # DimChange(d_model -> nodes -> 1)
    dimc = (unif(ks[0], (D_MODEL, NODES), D_MODEL),     # hidden.weight (in x out)
            unif(ks[1], (1, NODES), D_MODEL),           # hidden.bias
            unif(ks[2], (1, NODES), NODES),             # predict.weight (PyTorch layout)
            unif(ks[3], (), NODES))                     # predict.bias (scalar)

    # self-attention: fused [W_Q | W_K | W_V], fc, sim_conv (scalar affine)
    wq = unif(ks[4], (D_MODEL, D_K * N_HEADS), D_MODEL)
    wk = unif(ks[5], (D_MODEL, D_K * N_HEADS), D_MODEL)
    wv = unif(ks[6], (D_MODEL, D_V * N_HEADS), D_MODEL)
    self_attn = (jnp.concatenate([wq, wk, wv], axis=1),
                 unif(ks[7], (D_V * N_HEADS, D_MODEL), D_V * N_HEADS),
                 unif(ks[8], (), 1),                    # sim_conv.weight
                 unif(ks[9], (), 1))                    # sim_conv.bias

    # encoder-decoder attention: W_Q separate, fused [W_K | W_V]
    wq_e = unif(ks[10], (D_MODEL, D_K * N_HEADS), D_MODEL)
    wk_e = unif(ks[11], (D_MODEL, D_K * N_HEADS), D_MODEL)
    wv_e = unif(ks[12], (D_MODEL, D_V * N_HEADS), D_MODEL)
    enc_attn = (wq_e,
                jnp.concatenate([wk_e, wv_e], axis=1),
                unif(ks[13], (D_V * N_HEADS, D_MODEL), D_V * N_HEADS),
                unif(ks[14], (), 1),
                unif(ks[15], (), 1))

    ffn = (unif(ks[16], (D_MODEL, D_FF), D_MODEL),
           unif(ks[17], (D_FF, D_MODEL), D_FF))

    layer = {'self_attn': self_attn, 'enc_attn': enc_attn, 'ffn': ffn}
    return {'dimc': dimc, 'layers': [layer]}


if __name__ == "__main__":
    key = jax.random.PRNGKey(0)
    kp, k1, k2, k3, k4 = jax.random.split(key, 5)
    params = init_params(kp)

    dec_inputs = jax.random.normal(k1, (BATCH, SEQ_R, D_MODEL), jnp.float32)
    enc_inputs = jax.random.normal(k2, (BATCH, SEQ_R, D_MODEL), jnp.float32)
    enc_outputs = jax.random.normal(k3, (BATCH, SEQ_R, D_MODEL), jnp.float32)
    link_sim_mat = jax.random.normal(k4, (BATCH, SEQ_R, SEQ_R), jnp.float32)

    dec_out, self_attns, enc_attns = decoder_forward(
        params, dec_inputs, enc_inputs, enc_outputs, link_sim_mat)

    jax.block_until_ready(dec_out)
    jax.block_until_ready(self_attns)
    jax.block_until_ready(enc_attns)

    assert dec_out.shape == (BATCH, SEQ_R, D_MODEL)
    assert self_attns[0].shape == (BATCH, N_HEADS, SEQ_R, SEQ_R)
    assert enc_attns[0].shape == (BATCH, N_HEADS, SEQ_R, SEQ_R)
    assert bool(jnp.all(jnp.isfinite(dec_out)))
    assert bool(jnp.all(jnp.isfinite(self_attns[0])))
    assert bool(jnp.all(jnp.isfinite(enc_attns[0])))
    # softmax rows should sum to ~1 (approx reciprocal tolerance)
    assert bool(jnp.all(jnp.abs(jnp.sum(self_attns[0], axis=-1) - 1.0) < 1e-2))
    assert bool(jnp.all(jnp.abs(jnp.sum(enc_attns[0], axis=-1) - 1.0) < 1e-2))
    print("KERNEL_OK")
</pallas_src>

<mosaic_0001>
module attributes {stable_mosaic.version = 11 : i64} {
  func.func @decoder_layer_kernel(%arg0: i32, %arg1: memref<1x8x32xf32, #tpu.memory_space<vmem>>, %arg2: memref<1x8x32xf32, #tpu.memory_space<vmem>>, %arg3: memref<1x8x32xf32, #tpu.memory_space<vmem>>, %arg4: memref<1x8x8xf32, #tpu.memory_space<vmem>>, %arg5: memref<8x32xf32, #tpu.memory_space<vmem>>, %arg6: memref<32x16xf32, #tpu.memory_space<vmem>>, %arg7: memref<1x16xf32, #tpu.memory_space<vmem>>, %arg8: memref<1x16xf32, #tpu.memory_space<vmem>>, %arg9: memref<32x48xf32, #tpu.memory_space<vmem>>, %arg10: memref<16x32xf32, #tpu.memory_space<vmem>>, %arg11: memref<32x16xf32, #tpu.memory_space<vmem>>, %arg12: memref<32x32xf32, #tpu.memory_space<vmem>>, %arg13: memref<16x32xf32, #tpu.memory_space<vmem>>, %arg14: memref<32x256xf32, #tpu.memory_space<vmem>>, %arg15: memref<256x32xf32, #tpu.memory_space<vmem>>, %arg16: memref<5xf32, #tpu.memory_space<smem>>, %arg17: memref<1x8x32xf32, #tpu.memory_space<vmem>>, %arg18: memref<1x8x8xf32, #tpu.memory_space<vmem>>, %arg19: memref<1x8x8xf32, #tpu.memory_space<vmem>>) attributes {dimension_semantics = [#tpu.dimension_semantics<parallel>], iteration_bounds = array<i64: 2>, scalar_prefetch = 0 : i64, scratch_operands = 0 : i64, tpu.core_type = #tpu.core_type<tc>, window_params = [{transform_indices = @transform_0, window_bounds = array<i64: 1, 8, 32>}, {transform_indices = @transform_1, window_bounds = array<i64: 1, 8, 32>}, {transform_indices = @transform_2, window_bounds = array<i64: 1, 8, 32>}, {transform_indices = @transform_3, window_bounds = array<i64: 1, 8, 8>}, {pipeline_mode = #tpu.pipeline_mode<synchronous>, transform_indices = @transform_4, window_bounds = array<i64: 8, 32>}, {pipeline_mode = #tpu.pipeline_mode<synchronous>, transform_indices = @transform_5, window_bounds = array<i64: 32, 16>}, {pipeline_mode = #tpu.pipeline_mode<synchronous>, transform_indices = @transform_6, window_bounds = array<i64: 1, 16>}, {pipeline_mode = #tpu.pipeline_mode<synchronous>, transform_indices = @transform_7, window_bounds = array<i64: 1, 16>}, {pipeline_mode = #tpu.pipeline_mode<synchronous>, transform_indices = @transform_8, window_bounds = array<i64: 32, 48>}, {pipeline_mode = #tpu.pipeline_mode<synchronous>, transform_indices = @transform_9, window_bounds = array<i64: 16, 32>}, {pipeline_mode = #tpu.pipeline_mode<synchronous>, transform_indices = @transform_10, window_bounds = array<i64: 32, 16>}, {pipeline_mode = #tpu.pipeline_mode<synchronous>, transform_indices = @transform_11, window_bounds = array<i64: 32, 32>}, {pipeline_mode = #tpu.pipeline_mode<synchronous>, transform_indices = @transform_12, window_bounds = array<i64: 16, 32>}, {pipeline_mode = #tpu.pipeline_mode<synchronous>, transform_indices = @transform_13, window_bounds = array<i64: 32, 256>}, {pipeline_mode = #tpu.pipeline_mode<synchronous>, transform_indices = @transform_14, window_bounds = array<i64: 256, 32>}, {transform_indices = @transform_15, window_bounds = array<i64: 5>}, {transform_indices = @transform_16, window_bounds = array<i64: 1, 8, 32>}, {transform_indices = @transform_17, window_bounds = array<i64: 1, 8, 8>}, {transform_indices = @transform_18, window_bounds = array<i64: 1, 8, 8>}]} {
    %c0 = arith.constant 0 : index
    %c0_0 = arith.constant 0 : index
    %c0_1 = arith.constant 0 : index
    %0 = vector.load %arg1[%c0, %c0_0, %c0_1] : memref<1x8x32xf32, #tpu.memory_space<vmem>>, vector<1x8x32xf32>
    %1 = vector.shape_cast %0 : vector<1x8x32xf32> to vector<8x32xf32>
    %c0_2 = arith.constant 0 : index
    %c0_3 = arith.constant 0 : index
    %c0_4 = arith.constant 0 : index
    %2 = vector.load %arg2[%c0_2, %c0_3, %c0_4] : memref<1x8x32xf32, #tpu.memory_space<vmem>>, vector<1x8x32xf32>
    %3 = vector.shape_cast %2 : vector<1x8x32xf32> to vector<8x32xf32>
    %c0_5 = arith.constant 0 : index
    %c0_6 = arith.constant 0 : index
    %c0_7 = arith.constant 0 : index
    %4 = vector.load %arg3[%c0_5, %c0_6, %c0_7] : memref<1x8x32xf32, #tpu.memory_space<vmem>>, vector<1x8x32xf32>
    %5 = vector.shape_cast %4 : vector<1x8x32xf32> to vector<8x32xf32>
    %c0_8 = arith.constant 0 : index
    %c0_9 = arith.constant 0 : index
    %c0_10 = arith.constant 0 : index
    %6 = vector.load %arg4[%c0_8, %c0_9, %c0_10] : memref<1x8x8xf32, #tpu.memory_space<vmem>>, vector<1x8x8xf32>
    %7 = vector.shape_cast %6 : vector<1x8x8xf32> to vector<8x8xf32>
    %c0_11 = arith.constant 0 : index
    %8 = memref.load %arg16[%c0_11] : memref<5xf32, #tpu.memory_space<smem>>
    %c1 = arith.constant 1 : index
    %9 = memref.load %arg16[%c1] : memref<5xf32, #tpu.memory_space<smem>>
    %c2 = arith.constant 2 : index
    %10 = memref.load %arg16[%c2] : memref<5xf32, #tpu.memory_space<smem>>
    %c3 = arith.constant 3 : index
    %11 = memref.load %arg16[%c3] : memref<5xf32, #tpu.memory_space<smem>>
    %c4 = arith.constant 4 : index
    %12 = memref.load %arg16[%c4] : memref<5xf32, #tpu.memory_space<smem>>
    %c0_12 = arith.constant 0 : index
    %c0_13 = arith.constant 0 : index
    %13 = vector.load %arg5[%c0_12, %c0_13] : memref<8x32xf32, #tpu.memory_space<vmem>>, vector<8x32xf32>
    %14 = arith.addf %1, %13 : vector<8x32xf32>
    %c0_14 = arith.constant 0 : index
    %c0_15 = arith.constant 0 : index
    %15 = vector.load %arg6[%c0_14, %c0_15] : memref<32x16xf32, #tpu.memory_space<vmem>>, vector<32x16xf32>
    %cst = arith.constant dense<0.000000e+00> : vector<8x16xf32>
    %16 = tpu.matmul %1, %15, %cst {dimension_numbers = #tpu.dot_dimension_numbers<[1], [0], [0], [1], [0, 0, 1, 1], [], []>} : vector<8x32xf32>, vector<32x16xf32>, vector<8x16xf32> -> vector<8x16xf32>
    %c0_16 = arith.constant 0 : index
    %c0_17 = arith.constant 0 : index
    %17 = vector.load %arg7[%c0_16, %c0_17] : memref<1x16xf32, #tpu.memory_space<vmem>>, vector<1x16xf32>
    %18 = vector.broadcast %17 : vector<1x16xf32> to vector<8x16xf32>
    %19 = arith.addf %16, %18 : vector<8x16xf32>
    %c0_18 = arith.constant 0 : index
    %c0_19 = arith.constant 0 : index
    %20 = vector.load %arg8[%c0_18, %c0_19] : memref<1x16xf32, #tpu.memory_space<vmem>>, vector<1x16xf32>
    %cst_20 = arith.constant dense<0.000000e+00> : vector<1x8xf32>
    %21 = tpu.matmul %20, %19, %cst_20 {dimension_numbers = #tpu.dot_dimension_numbers<[1], [1], [0], [0], [0, 0, 1, 0], [], []>} : vector<1x16xf32>, vector<8x16xf32>, vector<1x8xf32> -> vector<1x8xf32>
    %22 = vector.broadcast %12 : f32 to vector<1x8xf32>
    %23 = arith.addf %21, %22 : vector<1x8xf32>
    %cst_21 = arith.constant 0.000000e+00 : f32
    %24 = vector.broadcast %cst_21 : f32 to vector<1x8xf32>
    %25 = arith.cmpf oeq, %23, %24 : vector<1x8xf32>
    %26 = arith.extui %25 : vector<1x8xi1> to vector<1x8xi32>
    %27 = arith.sitofp %26 : vector<1x8xi32> to vector<1x8xf32>
    %c0_22 = arith.constant 0 : index
    %c0_23 = arith.constant 0 : index
    %28 = vector.load %arg6[%c0_22, %c0_23] : memref<32x16xf32, #tpu.memory_space<vmem>>, vector<32x16xf32>
    %cst_24 = arith.constant dense<0.000000e+00> : vector<8x16xf32>
    %29 = tpu.matmul %3, %28, %cst_24 {dimension_numbers = #tpu.dot_dimension_numbers<[1], [0], [0], [1], [0, 0, 1, 1], [], []>} : vector<8x32xf32>, vector<32x16xf32>, vector<8x16xf32> -> vector<8x16xf32>
    %c0_25 = arith.constant 0 : index
    %c0_26 = arith.constant 0 : index
    %30 = vector.load %arg7[%c0_25, %c0_26] : memref<1x16xf32, #tpu.memory_space<vmem>>, vector<1x16xf32>
    %31 = vector.broadcast %30 : vector<1x16xf32> to vector<8x16xf32>
    %32 = arith.addf %29, %31 : vector<8x16xf32>
    %c0_27 = arith.constant 0 : index
    %c0_28 = arith.constant 0 : index
    %33 = vector.load %arg8[%c0_27, %c0_28] : memref<1x16xf32, #tpu.memory_space<vmem>>, vector<1x16xf32>
    %cst_29 = arith.constant dense<0.000000e+00> : vector<1x8xf32>
    %34 = tpu.matmul %33, %32, %cst_29 {dimension_numbers = #tpu.dot_dimension_numbers<[1], [1], [0], [0], [0, 0, 1, 0], [], []>} : vector<1x16xf32>, vector<8x16xf32>, vector<1x8xf32> -> vector<1x8xf32>
    %35 = vector.broadcast %12 : f32 to vector<1x8xf32>
    %36 = arith.addf %34, %35 : vector<1x8xf32>
    %cst_30 = arith.constant 0.000000e+00 : f32
    %37 = vector.broadcast %cst_30 : f32 to vector<1x8xf32>
    %38 = arith.cmpf oeq, %36, %37 : vector<1x8xf32>
    %39 = arith.extui %38 : vector<1x8xi1> to vector<1x8xi32>
    %40 = arith.sitofp %39 : vector<1x8xi32> to vector<1x8xf32>
    %41 = tpu.iota {dimensions = array<i32: 0>} : vector<8x8xi32>
    %42 = tpu.iota {dimensions = array<i32: 1>} : vector<8x8xi32>
    %43 = arith.cmpi sgt, %42, %41 : vector<8x8xi32>
    %44 = arith.extui %43 : vector<8x8xi1> to vector<8x8xi32>
    %45 = arith.sitofp %44 : vector<8x8xi32> to vector<8x8xf32>
    %46 = vector.broadcast %27 : vector<1x8xf32> to vector<8x8xf32>
    %47 = arith.addf %46, %45 : vector<8x8xf32>
    %48 = vector.shape_cast %40 : vector<1x8xf32> to vector<1x8xf32>
    %49 = vector.broadcast %48 : vector<1x8xf32> to vector<8x8xf32>
    %c0_31 = arith.constant 0 : index
    %c0_32 = arith.constant 0 : index
    %50 = vector.load %arg9[%c0_31, %c0_32] : memref<32x48xf32, #tpu.memory_space<vmem>>, vector<32x48xf32>
    %cst_33 = arith.constant dense<0.000000e+00> : vector<8x48xf32>
    %51 = tpu.matmul %14, %50, %cst_33 {dimension_numbers = #tpu.dot_dimension_numbers<[1], [0], [0], [1], [0, 0, 1, 1], [], []>} : vector<8x32xf32>, vector<32x48xf32>, vector<8x48xf32> -> vector<8x48xf32>
    %52 = vector.extract_strided_slice %51 {offsets = [0, 0], sizes = [8, 16], strides = [1, 1]} : vector<8x48xf32> to vector<8x16xf32>
    %53 = vector.extract_strided_slice %51 {offsets = [0, 16], sizes = [8, 16], strides = [1, 1]} : vector<8x48xf32> to vector<8x16xf32>
    %54 = vector.extract_strided_slice %51 {offsets = [0, 32], sizes = [8, 16], strides = [1, 1]} : vector<8x48xf32> to vector<8x16xf32>
    %c0_34 = arith.constant 0 : index
    %c0_35 = arith.constant 0 : index
    %55 = vector.load %arg10[%c0_34, %c0_35] : memref<16x32xf32, #tpu.memory_space<vmem>>, vector<16x32xf32>
    %cst_36 = arith.constant dense<0.000000e+00> : vector<8x8xf32>
    %56 = tpu.matmul %52, %53, %cst_36 {dimension_numbers = #tpu.dot_dimension_numbers<[1], [1], [0], [0], [0, 0, 1, 0], [], []>} : vector<8x16xf32>, vector<8x16xf32>, vector<8x8xf32> -> vector<8x8xf32>
    %cst_37 = arith.constant 2.500000e-01 : f32
    %57 = vector.broadcast %cst_37 : f32 to vector<8x8xf32>
    %58 = arith.mulf %56, %57 : vector<8x8xf32>
    %59 = vector.broadcast %8 : f32 to vector<8x8xf32>
    %60 = arith.mulf %7, %59 : vector<8x8xf32>
    %61 = vector.broadcast %9 : f32 to vector<8x8xf32>
    %62 = arith.addf %60, %61 : vector<8x8xf32>
    %63 = arith.addf %58, %62 : vector<8x8xf32>
    %cst_38 = arith.constant 0.000000e+00 : f32
    %64 = vector.broadcast %cst_38 : f32 to vector<8x8xf32>
    %65 = arith.cmpf ogt, %47, %64 : vector<8x8xf32>
    %cst_39 = arith.constant -1.000000e+09 : f32
    %66 = vector.broadcast %cst_39 : f32 to vector<8x8xf32>
    %67 = arith.select %65, %66, %63 : vector<8x8xi1>, vector<8x8xf32>
    %cst_40 = arith.constant dense<0xFF800000> : vector<8xf32>
    %68 = vector.multi_reduction <maximumf>, %67, %cst_40 [1] : vector<8x8xf32> to vector<8xf32>
    %69 = vector.shape_cast %68 : vector<8xf32> to vector<8x1xf32>
    %70 = vector.broadcast %69 : vector<8x1xf32> to vector<8x8xf32>
    %71 = arith.subf %67, %70 : vector<8x8xf32>
    %72 = math.exp %71 : vector<8x8xf32>
    %cst_41 = arith.constant dense<0.000000e+00> : vector<8xf32>
    %73 = vector.multi_reduction <add>, %72, %cst_41 [1] : vector<8x8xf32> to vector<8xf32>
    %74 = vector.shape_cast %73 : vector<8xf32> to vector<8x1xf32>
    %75 = tpu.reciprocal %74 {approx = true} : vector<8x1xf32> -> vector<8x1xf32>
    %76 = vector.broadcast %75 : vector<8x1xf32> to vector<8x8xf32>
    %77 = arith.mulf %72, %76 : vector<8x8xf32>
    %cst_42 = arith.constant dense<0.000000e+00> : vector<8x16xf32>
    %78 = tpu.matmul %77, %54, %cst_42 {dimension_numbers = #tpu.dot_dimension_numbers<[1], [0], [0], [1], [0, 0, 1, 1], [], []>} : vector<8x8xf32>, vector<8x16xf32>, vector<8x16xf32> -> vector<8x16xf32>
    %cst_43 = arith.constant dense<0.000000e+00> : vector<8x32xf32>
    %79 = tpu.matmul %78, %55, %cst_43 {dimension_numbers = #tpu.dot_dimension_numbers<[1], [0], [0], [1], [0, 0, 1, 1], [], []>} : vector<8x16xf32>, vector<16x32xf32>, vector<8x32xf32> -> vector<8x32xf32>
    %80 = arith.addf %79, %14 : vector<8x32xf32>
    %cst_44 = arith.constant dense<0.000000e+00> : vector<8xf32>
    %81 = vector.multi_reduction <add>, %80, %cst_44 [1] : vector<8x32xf32> to vector<8xf32>
    %82 = vector.shape_cast %81 : vector<8xf32> to vector<8x1xf32>
    %cst_45 = arith.constant 3.200000e+01 : f32
    %83 = vector.broadcast %cst_45 : f32 to vector<8x1xf32>
    %84 = arith.divf %82, %83 : vector<8x1xf32>
    %85 = vector.broadcast %84 : vector<8x1xf32> to vector<8x32xf32>
    %86 = arith.subf %80, %85 : vector<8x32xf32>
    %87 = arith.mulf %86, %86 : vector<8x32xf32>
    %cst_46 = arith.constant dense<0.000000e+00> : vector<8xf32>
    %88 = vector.multi_reduction <add>, %87, %cst_46 [1] : vector<8x32xf32> to vector<8xf32>
    %89 = vector.shape_cast %88 : vector<8xf32> to vector<8x1xf32>
    %cst_47 = arith.constant 3.200000e+01 : f32
    %90 = vector.broadcast %cst_47 : f32 to vector<8x1xf32>
    %91 = arith.divf %89, %90 : vector<8x1xf32>
    %92 = vector.broadcast %84 : vector<8x1xf32> to vector<8x32xf32>
    %93 = arith.subf %80, %92 : vector<8x32xf32>
    %cst_48 = arith.constant 9.99999974E-6 : f32
    %94 = vector.broadcast %cst_48 : f32 to vector<8x1xf32>
    %95 = arith.addf %91, %94 : vector<8x1xf32>
    %96 = math.rsqrt %95 : vector<8x1xf32>
    %97 = vector.broadcast %96 : vector<8x1xf32> to vector<8x32xf32>
    %98 = arith.mulf %93, %97 : vector<8x32xf32>
    %c0_49 = arith.constant 0 : index
    %c0_50 = arith.constant 0 : index
    %99 = vector.load %arg11[%c0_49, %c0_50] : memref<32x16xf32, #tpu.memory_space<vmem>>, vector<32x16xf32>
    %cst_51 = arith.constant dense<0.000000e+00> : vector<8x16xf32>
    %100 = tpu.matmul %98, %99, %cst_51 {dimension_numbers = #tpu.dot_dimension_numbers<[1], [0], [0], [1], [0, 0, 1, 1], [], []>} : vector<8x32xf32>, vector<32x16xf32>, vector<8x16xf32> -> vector<8x16xf32>
    %c0_52 = arith.constant 0 : index
    %c0_53 = arith.constant 0 : index
    %101 = vector.load %arg12[%c0_52, %c0_53] : memref<32x32xf32, #tpu.memory_space<vmem>>, vector<32x32xf32>
    %cst_54 = arith.constant dense<0.000000e+00> : vector<8x32xf32>
    %102 = tpu.matmul %5, %101, %cst_54 {dimension_numbers = #tpu.dot_dimension_numbers<[1], [0], [0], [1], [0, 0, 1, 1], [], []>} : vector<8x32xf32>, vector<32x32xf32>, vector<8x32xf32> -> vector<8x32xf32>
    %103 = vector.extract_strided_slice %102 {offsets = [0, 0], sizes = [8, 16], strides = [1, 1]} : vector<8x32xf32> to vector<8x16xf32>
    %104 = vector.extract_strided_slice %102 {offsets = [0, 16], sizes = [8, 16], strides = [1, 1]} : vector<8x32xf32> to vector<8x16xf32>
    %c0_55 = arith.constant 0 : index
    %c0_56 = arith.constant 0 : index
    %105 = vector.load %arg13[%c0_55, %c0_56] : memref<16x32xf32, #tpu.memory_space<vmem>>, vector<16x32xf32>
    %cst_57 = arith.constant dense<0.000000e+00> : vector<8x8xf32>
    %106 = tpu.matmul %100, %103, %cst_57 {dimension_numbers = #tpu.dot_dimension_numbers<[1], [1], [0], [0], [0, 0, 1, 0], [], []>} : vector<8x16xf32>, vector<8x16xf32>, vector<8x8xf32> -> vector<8x8xf32>
    %cst_58 = arith.constant 2.500000e-01 : f32
    %107 = vector.broadcast %cst_58 : f32 to vector<8x8xf32>
    %108 = arith.mulf %106, %107 : vector<8x8xf32>
    %109 = vector.broadcast %10 : f32 to vector<8x8xf32>
    %110 = arith.mulf %7, %109 : vector<8x8xf32>
    %111 = vector.broadcast %11 : f32 to vector<8x8xf32>
    %112 = arith.addf %110, %111 : vector<8x8xf32>
    %113 = arith.addf %108, %112 : vector<8x8xf32>
    %cst_59 = arith.constant 0.000000e+00 : f32
    %114 = vector.broadcast %cst_59 : f32 to vector<8x8xf32>
    %115 = arith.cmpf ogt, %49, %114 : vector<8x8xf32>
    %cst_60 = arith.constant -1.000000e+09 : f32
    %116 = vector.broadcast %cst_60 : f32 to vector<8x8xf32>
    %117 = arith.select %115, %116, %113 : vector<8x8xi1>, vector<8x8xf32>
    %cst_61 = arith.constant dense<0xFF800000> : vector<8xf32>
    %118 = vector.multi_reduction <maximumf>, %117, %cst_61 [1] : vector<8x8xf32> to vector<8xf32>
    %119 = vector.shape_cast %118 : vector<8xf32> to vector<8x1xf32>
    %120 = vector.broadcast %119 : vector<8x1xf32> to vector<8x8xf32>
    %121 = arith.subf %117, %120 : vector<8x8xf32>
    %122 = math.exp %121 : vector<8x8xf32>
    %cst_62 = arith.constant dense<0.000000e+00> : vector<8xf32>
    %123 = vector.multi_reduction <add>, %122, %cst_62 [1] : vector<8x8xf32> to vector<8xf32>
    %124 = vector.shape_cast %123 : vector<8xf32> to vector<8x1xf32>
    %125 = tpu.reciprocal %124 {approx = true} : vector<8x1xf32> -> vector<8x1xf32>
    %126 = vector.broadcast %125 : vector<8x1xf32> to vector<8x8xf32>
    %127 = arith.mulf %122, %126 : vector<8x8xf32>
    %cst_63 = arith.constant dense<0.000000e+00> : vector<8x16xf32>
    %128 = tpu.matmul %127, %104, %cst_63 {dimension_numbers = #tpu.dot_dimension_numbers<[1], [0], [0], [1], [0, 0, 1, 1], [], []>} : vector<8x8xf32>, vector<8x16xf32>, vector<8x16xf32> -> vector<8x16xf32>
    %cst_64 = arith.constant dense<0.000000e+00> : vector<8x32xf32>
    %129 = tpu.matmul %128, %105, %cst_64 {dimension_numbers = #tpu.dot_dimension_numbers<[1], [0], [0], [1], [0, 0, 1, 1], [], []>} : vector<8x16xf32>, vector<16x32xf32>, vector<8x32xf32> -> vector<8x32xf32>
    %130 = arith.addf %129, %98 : vector<8x32xf32>
    %cst_65 = arith.constant dense<0.000000e+00> : vector<8xf32>
    %131 = vector.multi_reduction <add>, %130, %cst_65 [1] : vector<8x32xf32> to vector<8xf32>
    %132 = vector.shape_cast %131 : vector<8xf32> to vector<8x1xf32>
    %cst_66 = arith.constant 3.200000e+01 : f32
    %133 = vector.broadcast %cst_66 : f32 to vector<8x1xf32>
    %134 = arith.divf %132, %133 : vector<8x1xf32>
    %135 = vector.broadcast %134 : vector<8x1xf32> to vector<8x32xf32>
    %136 = arith.subf %130, %135 : vector<8x32xf32>
    %137 = arith.mulf %136, %136 : vector<8x32xf32>
    %cst_67 = arith.constant dense<0.000000e+00> : vector<8xf32>
    %138 = vector.multi_reduction <add>, %137, %cst_67 [1] : vector<8x32xf32> to vector<8xf32>
    %139 = vector.shape_cast %138 : vector<8xf32> to vector<8x1xf32>
    %cst_68 = arith.constant 3.200000e+01 : f32
    %140 = vector.broadcast %cst_68 : f32 to vector<8x1xf32>
    %141 = arith.divf %139, %140 : vector<8x1xf32>
    %142 = vector.broadcast %134 : vector<8x1xf32> to vector<8x32xf32>
    %143 = arith.subf %130, %142 : vector<8x32xf32>
    %cst_69 = arith.constant 9.99999974E-6 : f32
    %144 = vector.broadcast %cst_69 : f32 to vector<8x1xf32>
    %145 = arith.addf %141, %144 : vector<8x1xf32>
    %146 = math.rsqrt %145 : vector<8x1xf32>
    %147 = vector.broadcast %146 : vector<8x1xf32> to vector<8x32xf32>
    %148 = arith.mulf %143, %147 : vector<8x32xf32>
    %c0_70 = arith.constant 0 : index
    %c0_71 = arith.constant 0 : index
    %149 = vector.load %arg14[%c0_70, %c0_71] : memref<32x256xf32, #tpu.memory_space<vmem>>, vector<32x256xf32>
    %cst_72 = arith.constant dense<0.000000e+00> : vector<8x256xf32>
    %150 = tpu.matmul %148, %149, %cst_72 {dimension_numbers = #tpu.dot_dimension_numbers<[1], [0], [0], [1], [0, 0, 1, 1], [], []>} : vector<8x32xf32>, vector<32x256xf32>, vector<8x256xf32> -> vector<8x256xf32>
    %cst_73 = arith.constant 0.000000e+00 : f32
    %151 = vector.broadcast %cst_73 : f32 to vector<8x256xf32>
    %152 = arith.maximumf %150, %151 : vector<8x256xf32>
    %c0_74 = arith.constant 0 : index
    %c0_75 = arith.constant 0 : index
    %153 = vector.load %arg15[%c0_74, %c0_75] : memref<256x32xf32, #tpu.memory_space<vmem>>, vector<256x32xf32>
    %cst_76 = arith.constant dense<0.000000e+00> : vector<8x32xf32>
    %154 = tpu.matmul %152, %153, %cst_76 {dimension_numbers = #tpu.dot_dimension_numbers<[1], [0], [0], [1], [0, 0, 1, 1], [], []>} : vector<8x256xf32>, vector<256x32xf32>, vector<8x32xf32> -> vector<8x32xf32>
    %155 = arith.addf %154, %148 : vector<8x32xf32>
    %cst_77 = arith.constant dense<0.000000e+00> : vector<8xf32>
    %156 = vector.multi_reduction <add>, %155, %cst_77 [1] : vector<8x32xf32> to vector<8xf32>
    %157 = vector.shape_cast %156 : vector<8xf32> to vector<8x1xf32>
    %cst_78 = arith.constant 3.200000e+01 : f32
    %158 = vector.broadcast %cst_78 : f32 to vector<8x1xf32>
    %159 = arith.divf %157, %158 : vector<8x1xf32>
    %160 = vector.broadcast %159 : vector<8x1xf32> to vector<8x32xf32>
    %161 = arith.subf %155, %160 : vector<8x32xf32>
    %162 = arith.mulf %161, %161 : vector<8x32xf32>
    %cst_79 = arith.constant dense<0.000000e+00> : vector<8xf32>
    %163 = vector.multi_reduction <add>, %162, %cst_79 [1] : vector<8x32xf32> to vector<8xf32>
    %164 = vector.shape_cast %163 : vector<8xf32> to vector<8x1xf32>
    %cst_80 = arith.constant 3.200000e+01 : f32
    %165 = vector.broadcast %cst_80 : f32 to vector<8x1xf32>
    %166 = arith.divf %164, %165 : vector<8x1xf32>
    %167 = vector.broadcast %159 : vector<8x1xf32> to vector<8x32xf32>
    %168 = arith.subf %155, %167 : vector<8x32xf32>
    %cst_81 = arith.constant 9.99999974E-6 : f32
    %169 = vector.broadcast %cst_81 : f32 to vector<8x1xf32>
    %170 = arith.addf %166, %169 : vector<8x1xf32>
    %171 = math.rsqrt %170 : vector<8x1xf32>
    %172 = vector.broadcast %171 : vector<8x1xf32> to vector<8x32xf32>
    %173 = arith.mulf %168, %172 : vector<8x32xf32>
    %c0_82 = arith.constant 0 : index
    %c0_83 = arith.constant 0 : index
    %c0_84 = arith.constant 0 : index
    %174 = vector.load %arg17[%c0_82, %c0_83, %c0_84] : memref<1x8x32xf32, #tpu.memory_space<vmem>>, vector<1x8x32xf32>
    %175 = vector.shape_cast %174 : vector<1x8x32xf32> to vector<8x32xf32>
    %176 = vector.shape_cast %173 : vector<8x32xf32> to vector<1x8x32xf32>
    tpu.vector_store %arg17[%c0_82, %c0_83, %c0_84], %176 {strides = array<i32>} : memref<1x8x32xf32, #tpu.memory_space<vmem>>, vector<1x8x32xf32>,
    %c0_85 = arith.constant 0 : index
    %c0_86 = arith.constant 0 : index
    %c0_87 = arith.constant 0 : index
    %177 = vector.load %arg18[%c0_85, %c0_86, %c0_87] : memref<1x8x8xf32, #tpu.memory_space<vmem>>, vector<1x8x8xf32>
    %178 = vector.shape_cast %177 : vector<1x8x8xf32> to vector<8x8xf32>
    %179 = vector.shape_cast %77 : vector<8x8xf32> to vector<1x8x8xf32>
    tpu.vector_store %arg18[%c0_85, %c0_86, %c0_87], %179 {strides = array<i32>} : memref<1x8x8xf32, #tpu.memory_space<vmem>>, vector<1x8x8xf32>,
    %c0_88 = arith.constant 0 : index
    %c0_89 = arith.constant 0 : index
    %c0_90 = arith.constant 0 : index
    %180 = vector.load %arg19[%c0_88, %c0_89, %c0_90] : memref<1x8x8xf32, #tpu.memory_space<vmem>>, vector<1x8x8xf32>
    %181 = vector.shape_cast %180 : vector<1x8x8xf32> to vector<8x8xf32>
    %182 = vector.shape_cast %127 : vector<8x8xf32> to vector<1x8x8xf32>
    tpu.vector_store %arg19[%c0_88, %c0_89, %c0_90], %182 {strides = array<i32>} : memref<1x8x8xf32, #tpu.memory_space<vmem>>, vector<1x8x8xf32>,
    return
  }
  func.func @transform_0(%arg0: i32) -> (i32, i32, i32) {
    %c0_i32 = arith.constant 0 : i32
    %c0_i32_0 = arith.constant 0 : i32
    %c0_i32_1 = arith.constant 0 : i32
    return %arg0, %c0_i32, %c0_i32_0 : i32, i32, i32
  }
  func.func @transform_1(%arg0: i32) -> (i32, i32, i32) {
    %c0_i32 = arith.constant 0 : i32
    %c0_i32_0 = arith.constant 0 : i32
    %c0_i32_1 = arith.constant 0 : i32
    return %arg0, %c0_i32, %c0_i32_0 : i32, i32, i32
  }
  func.func @transform_2(%arg0: i32) -> (i32, i32, i32) {
    %c0_i32 = arith.constant 0 : i32
    %c0_i32_0 = arith.constant 0 : i32
    %c0_i32_1 = arith.constant 0 : i32
    return %arg0, %c0_i32, %c0_i32_0 : i32, i32, i32
  }
  func.func @transform_3(%arg0: i32) -> (i32, i32, i32) {
    %c0_i32 = arith.constant 0 : i32
    %c0_i32_0 = arith.constant 0 : i32
    %c0_i32_1 = arith.constant 0 : i32
    return %arg0, %c0_i32, %c0_i32_0 : i32, i32, i32
  }
  func.func @transform_4(%arg0: i32) -> (i32, i32) {
    %c0_i32 = arith.constant 0 : i32
    %c0_i32_0 = arith.constant 0 : i32
    %c0_i32_1 = arith.constant 0 : i32
    return %c0_i32, %c0_i32_0 : i32, i32
  }
  func.func @transform_5(%arg0: i32) -> (i32, i32) {
    %c0_i32 = arith.constant 0 : i32
    %c0_i32_0 = arith.constant 0 : i32
    %c0_i32_1 = arith.constant 0 : i32
    return %c0_i32, %c0_i32_0 : i32, i32
  }
  func.func @transform_6(%arg0: i32) -> (i32, i32) {
    %c0_i32 = arith.constant 0 : i32
    %c0_i32_0 = arith.constant 0 : i32
    %c0_i32_1 = arith.constant 0 : i32
    return %c0_i32, %c0_i32_0 : i32, i32
  }
  func.func @transform_7(%arg0: i32) -> (i32, i32) {
    %c0_i32 = arith.constant 0 : i32
    %c0_i32_0 = arith.constant 0 : i32
    %c0_i32_1 = arith.constant 0 : i32
    return %c0_i32, %c0_i32_0 : i32, i32
  }
  func.func @transform_8(%arg0: i32) -> (i32, i32) {
    %c0_i32 = arith.constant 0 : i32
    %c0_i32_0 = arith.constant 0 : i32
    %c0_i32_1 = arith.constant 0 : i32
    return %c0_i32, %c0_i32_0 : i32, i32
  }
  func.func @transform_9(%arg0: i32) -> (i32, i32) {
    %c0_i32 = arith.constant 0 : i32
    %c0_i32_0 = arith.constant 0 : i32
    %c0_i32_1 = arith.constant 0 : i32
    return %c0_i32, %c0_i32_0 : i32, i32
  }
  func.func @transform_10(%arg0: i32) -> (i32, i32) {
    %c0_i32 = arith.constant 0 : i32
    %c0_i32_0 = arith.constant 0 : i32
    %c0_i32_1 = arith.constant 0 : i32
    return %c0_i32, %c0_i32_0 : i32, i32
  }
  func.func @transform_11(%arg0: i32) -> (i32, i32) {
    %c0_i32 = arith.constant 0 : i32
    %c0_i32_0 = arith.constant 0 : i32
    %c0_i32_1 = arith.constant 0 : i32
    return %c0_i32, %c0_i32_0 : i32, i32
  }
  func.func @transform_12(%arg0: i32) -> (i32, i32) {
    %c0_i32 = arith.constant 0 : i32
    %c0_i32_0 = arith.constant 0 : i32
    %c0_i32_1 = arith.constant 0 : i32
    return %c0_i32, %c0_i32_0 : i32, i32
  }
  func.func @transform_13(%arg0: i32) -> (i32, i32) {
    %c0_i32 = arith.constant 0 : i32
    %c0_i32_0 = arith.constant 0 : i32
    %c0_i32_1 = arith.constant 0 : i32
    return %c0_i32, %c0_i32_0 : i32, i32
  }
  func.func @transform_14(%arg0: i32) -> (i32, i32) {
    %c0_i32 = arith.constant 0 : i32
    %c0_i32_0 = arith.constant 0 : i32
    %c0_i32_1 = arith.constant 0 : i32
    return %c0_i32, %c0_i32_0 : i32, i32
  }
  func.func @transform_15(%arg0: i32) -> i32 {
    %c0_i32 = arith.constant 0 : i32
    %c0_i32_0 = arith.constant 0 : i32
    return %c0_i32 : i32
  }
  func.func @transform_16(%arg0: i32) -> (i32, i32, i32) {
    %c0_i32 = arith.constant 0 : i32
    %c0_i32_0 = arith.constant 0 : i32
    %c0_i32_1 = arith.constant 0 : i32
    return %arg0, %c0_i32, %c0_i32_0 : i32, i32, i32
  }
  func.func @transform_17(%arg0: i32) -> (i32, i32, i32) {
    %c0_i32 = arith.constant 0 : i32
    %c0_i32_0 = arith.constant 0 : i32
    %c0_i32_1 = arith.constant 0 : i32
    return %arg0, %c0_i32, %c0_i32_0 : i32, i32, i32
  }
  func.func @transform_18(%arg0: i32) -> (i32, i32, i32) {
    %c0_i32 = arith.constant 0 : i32
    %c0_i32_0 = arith.constant 0 : i32
    %c0_i32_1 = arith.constant 0 : i32
    return %arg0, %c0_i32, %c0_i32_0 : i32, i32, i32
  }
}

</mosaic_0001>

<bundles_post_ra>
// kernel: decoder_forward.1
= control target key start
LH: loop header
LB: loop body
LE: loop exit
PB: predicated region body
PF: predicated region fallthrough
CT: control target
= control target key end

     0   :  { %s3302_s0 = inlined_call_operand.vmem [shape: f32[2,8,32], index: 0, kind: input, shape index: {}]   ;;  %s3303_s1 = inlined_call_operand.vmem [shape: f32[2,8,32], index: 1, kind: input, shape index: {}]   ;;  %s3304_s2 = inlined_call_operand.vmem [shape: f32[2,8,32], index: 2, kind: input, shape index: {}]   ;;  %s3305_s3 = inlined_call_operand.vmem [shape: f32[2,8,8], index: 3, kind: input, shape index: {}]   ;;  %s3306_s4 = inlined_call_operand.vmem [shape: f32[8,32], index: 4, kind: input, shape index: {}]   ;;  %s3307_s5 = inlined_call_operand.vmem [shape: f32[32,16], index: 5, kind: input, shape index: {}]   ;;  %s3308_s6 = inlined_call_operand.vmem [shape: f32[1,16], index: 6, kind: input, shape index: {}]   ;;  %s3309_s7 = inlined_call_operand.vmem [shape: f32[1,16], index: 7, kind: input, shape index: {}]   ;;  %s3310_s8 = inlined_call_operand.vmem [shape: f32[32,48], index: 8, kind: input, shape index: {}]   ;;  %s3311_s9 = inlined_call_operand.vmem [shape: f32[16,32], index: 9, kind: input, shape index: {}]   ;;  %s3312_s10 = inlined_call_operand.vmem [shape: f32[32,16], index: 10, kind: input, shape index: {}]   ;;  %s3313_s11 = inlined_call_operand.vmem [shape: f32[32,32], index: 11, kind: input, shape index: {}]   ;;  %s3314_s12 = inlined_call_operand.vmem [shape: f32[16,32], index: 12, kind: input, shape index: {}]   ;;  %s3315_s13 = inlined_call_operand.vmem [shape: f32[32,256], index: 13, kind: input, shape index: {}]   ;;  %s3316_s14 = inlined_call_operand.vmem [shape: f32[256,32], index: 14, kind: input, shape index: {}]   ;;  %s3317_s15 = inlined_call_operand.vmem [shape: f32[5], index: 15, kind: input, shape index: {}]   ;;  %s3318_s16 = inlined_call_operand.hbm [shape: f32[2,8,32], index: 16, kind: output, shape index: {0}]   ;;  %s3319_s17 = inlined_call_operand.hbm [shape: f32[2,8,8], index: 17, kind: output, shape index: {1}]   ;;  %s3320_s18 = inlined_call_operand.hbm [shape: f32[2,8,8], index: 18, kind: output, shape index: {2}]  }
   0x1   :  { %3325 = sst [smem:[#allocation13_spill]] %s3302_s0 }
   0x2   :  { %3326 = sst [smem:[#allocation14_spill]] %s3303_s1 }
   0x3   :  { %3327 = sst [smem:[#allocation15_spill]] %s3304_s2 }
   0x4   :  { %3328 = sst [smem:[#allocation16_spill]] %s3305_s3 }
   0x5   :  { %3329 = sst [smem:[#allocation17_spill]] %s3306_s4 }
   0x6   :  { %3330 = sst [smem:[#allocation18_spill]] %s3307_s5 }
   0x7   :  { %3331 = sst [smem:[#allocation19_spill]] %s3308_s6 }
   0x8   :  { %3332 = sst [smem:[#allocation20_spill]] %s3309_s7 }
   0x9   :  { %3333 = sst [smem:[#allocation21_spill]] %s3310_s8 }
   0xa   :  { %3334 = sst [smem:[#allocation22_spill]] %s3317_s15 }
   0xb   :  { %24 = vsyncpa [#allocation4], 0 }
   0xc   :  { %25 = vsyncpa [#allocation3], 0 }
   0xd   :  { %27 = vsyncpa [#allocation3 + $0x1], 0 }
   0xe   :  { %28 = vsyncpa [#allocation7], 0 }
   0xf   :  { %30 = vsyncpa [#allocation7 + $0x1], 0  ;;  %s2795_s27 = smov 0   ;;  %s2797_s28 = smov 0  }
  0x10   :  { %s2799_s29 = smov 0   ;;  %s2801_s30 = smov 0  }
  0x11 LB: > { %s2816_s0 = sadd.s32 4294967295, %s2689_s30   ;;  %s3321_s19 = sadd.s32 4294967294, %s2689_s30   ;;  %s2689_s30 = sphi %s2801_s30, %s3357_s30   ;;  %s2685_s29 = sphi %s2799_s29, %s3356_s29   ;;  %s2681_s28 = sphi %s2797_s28, %s3355_s28   ;;  %s2677_s27 = sphi %s2795_s27, %s3354_s27  }
  0x12   : > { %s2820_s1 = sadd.s32 1, %s2689_s30   ;;  %s399_s20 = sadd.s32 1, %s2685_s29 }
  0x13   : > { %s396_s21 = ssub.s32 %s2689_s30, %s2820_s1  ;;  %p409_p0 = scmp.ne.s32.totalorder %s2685_s29, %s2681_s28 }
  0x14   : > { %p397_p1 = scmp.eq.s32.totalorder %s396_s21, 0  ;;  %p410_p2 = scmp.eq.s32.totalorder %s2816_s0, 1 }
  0x15   : > { %p415_p3 = scmp.ne.s32.totalorder %s2681_s28, %s2677_s27  ;;  %p416_p4 = scmp.eq.s32.totalorder %s3321_s19, 1 }
  0x16   : > { %s2833_s22 = scalar_select %p397_p1, %s2685_s29, %s399_s20  }
  0x17   : > { %p2835_p5 = por %p410_p2, %p409_p0  ;;  %p2839_p6 = por %p416_p4, %p415_p3 }
  0x18   : > { %3335 = sst [smem:[#allocation12_spill]] %s2833_s22  ;;  %p2170_p7 = scmp.ge.s32.totalorder %s2689_s30, 1 }
  0x19   : > { %p475_p8 = scmp.lt.s32.totalorder %s2689_s30, 3  ;;  %p2493_p9 = scmp.eq.s32.totalorder %s2816_s0, 0 }
  0x1a   : > { %s3339_s15 = sld [smem:[#allocation22_spill]] }
  0x1b   : > { %p2846_p10 = pnand %p2170_p7, %p475_p8 }
  0x1d   : > { %p2479_p11 = pneg %p2846_p10 }
  0x1f   : > { %p2480_p12 = pnand %p2493_p9, %p2479_p11 }
  0x20   : > { %s521_s20 = sshll.u32 %s3339_s15, 4  ;;  %s522_s20 = int_to_ptr.vmem [resolvable:$true] %s521_s20 }
  0x21   : > { %s2548_s21 = scalar_lea.vmem %s522_s20, 16  ;;  %p2550_p0 = pneg %p2480_p12 }
  0x22   : > { %p2549_p13 = scmp.ne.s32.totalorder %s522_s20, %s2548_s21  ;;  %p2556_p3 = scmp.lt.s32.totalorder %s522_s20, %s522_s20 }
  0x23   : > { %p2557_p4 = scmp.lt.s32.totalorder %s2548_s21, %s2548_s21 }
  0x24   : > { %p2551_p1 = pnand %p2550_p0, %p2549_p13 }
  0x25   : > { %p2558_p7 = por %p2557_p4, %p2556_p3 }
  0x26   : > { %p2552_p2 = pneg %p2551_p1 }
  0x28   : > { %p2559_p8 = pnand %p2558_p7, %p2552_p2 }
  0x2a   : > { %2562 = shalt.err (!%p2559_p8)
}
  0x2b   : > { %s2691_s19 = smov [#allocation2]   ;;  %562 = sbr.rel (%p2846_p10) target bundleno = 4349 (0x10fd), region = 84 }
  0x2c   : > { %2482 = dma.vmem_to_smem (!%p2480_p12), %s522_s20, 16, %s2691_s19, [#allocation4]  }
  0x32   : > { %2664 = dma.done.wait (%p2493_p9), [#allocation4], 16  }
  0x33   : > { %2666 = vsyncadd (%p2493_p9), [#allocation4], 4294967280 }
  0x34   : > { %568 = sfence }
  0x35   : > { %s3340_s5 = sld [smem:[#allocation18_spill]]  ;;  %v2692_v3 = vmov 0.0|0.0   ;;  %vm2693_vm0 = vmmov 0   ;;  %v2694_v6 = vmov 0.0   ;;  %p638_p9 = scmp.lt.s32.totalorder %s2816_s0, 1  ;;  %vm676_vm1 = vcmask 261120  }
  0x36   : > { %2393 = vmatprep.subr.bf16.mxu0 %v2692_v3  ;;  %2302 = vmatprep.mubr.msk.f32.mxu0 %vm2693_vm0, %v2694_v6  ;;  %s3341_s21 = sld [smem:[#allocation13_spill]]  ;;  %s3342_s6 = sld [smem:[#allocation19_spill]]  ;;  %vm752_vm2 = vcmask 130048   ;;  %v981_v34 = vlaneseq  ;;  %vm1161_vm5 = vcmask 64512   ;;  %v1074_v59 = vld [vmem:[%s3311_s9] sm:$0xff]  ;;  %v1075_v60 = vld [vmem:[%s3311_s9 + $0x8] sm:$0xff] }
  0x37   : > { %2337 = vmatprep.subr.mxu1 %v2694_v6  ;;  %2339 = vmatprep.mubr.msk.f32.mxu1 %vm2693_vm0, %v2694_v6  ;;  %s639_s15 = scalar_select %p638_p9, %s2816_s0, 1  ;;  %v2412_v61 = vpack.c.bf16 %v1075_v60, %v1074_v59 }
  0x38   : > { %s3343_s7 = sld [smem:[#allocation20_spill]]  ;;  %s3345_s8 = sld [smem:[#allocation21_spill]]  ;;  %v2955_v36 = vshrl.u32 %v981_v34, 7  ;;  %v984_v37 = vand.u32 127, %v981_v34 }
  0x39   : > { %s2884_s25 = sshll.u32 %s639_s15, 3  ;;  %s3346_s4 = sld [smem:[#allocation17_spill]] }
  0x3a   : > { %s3324_s15 = smov 112   ;;  %s2950_s22 = sld [smem:[#allocation2 + $0x4]]  ;;  %v990_v38 = vsub.s32 0, %v2955_v36  ;;  %vm985_vm4 = vcmp.gt.s32.totalorder %v984_v37, %v2955_v36  ;;  %v1490_v36 = vld [vmem:[%s3314_s12] sm:$0xff] }
  0x3b   : > { %v665_v0 = vld [vmem:[%s3340_s5] sm:$0xff]  ;;  %v666_v1 = vld [vmem:[%s3340_s5 + $0x8] sm:$0xff]  ;;  %v667_v2 = vld [vmem:[%s3340_s5 + $0x10] sm:$0xff]  ;;  %s658_s26 = sld [smem:[#allocation2]]  ;;  %s3347_s3 = sld [smem:[#allocation16_spill]]  ;;  %v2195_v45 = vsel %vm985_vm4, 1.0, %v2694_v6 }
  0x3c   : > { %v2394_v4 = vpack.c.bf16 %v666_v1, %v665_v0  ;;  %v668_v5 = vld [vmem:[%s3340_s5 + $0x18] sm:$0xff]  ;;  %s641_s19 = scalar_lea.vmem %s3341_s21, %s2884_s25  ;;  %v2186_v9 = vld [vmem:[%s3342_s6] ss:$0 sm:$0xff]  ;;  %s2182_s21 = sld [smem:[#allocation2 + $0x1]] }
  0x3d   : > { %v2397_v7 = vpack.c.bf16 %v668_v5, %v667_v2  ;;  %v654_v8 = vld [vmem:[%s641_s19] sm:$0xff]  ;;  %s3344_s19 = sld [smem:[#allocation14_spill]]  ;;  %s2696_s5 = smov 96  }
  0x3e   : > { %2395 = vmatpush3.bf16.msra.mxu0 %v2394_v4  ;;  %v750_v13 = vld [vmem:[%s3343_s7] sm:$0x1]  ;;  %v998_v19 = vld [vmem:[%s3345_s8 + $0x8] sm:$0xff]  ;;  %v999_v23 = vld [vmem:[%s3345_s8 + $0x10] sm:$0xff]  ;;  %s3348_s6 = sld [smem:[#allocation15_spill]] }
  0x3f   : > { %2396 = vmatprep.subr.bf16.mxu0 %v2692_v3  ;;  %v997_v18 = vld [vmem:[%s3345_s8] sm:$0xff]  ;;  %v1000_v24 = vld [vmem:[%s3345_s8 + $0x18] sm:$0xff]  ;;  %s2183_s8 = sld [smem:[#allocation2 + $0x2]] }
  0x40   : > { %v2406_v22 = vpack.c.bf16 %v998_v19, %v997_v18  ;;  %v663_v25 = vld [vmem:[%s3346_s4] sm:$0xff]  ;;  %v2409_v26 = vpack.c.bf16 %v1000_v24, %v999_v23  ;;  %v751_v33 = vstv %s2950_s22  ;;  %v1415_v18 = vld [vmem:[%s3313_s11 + $0x10] sm:$0xff]  ;;  %v1416_v19 = vld [vmem:[%s3313_s11 + $0x18] sm:$0xff]  ;;  %s3349_s22 = smov 112  }
  0x41   : > { %v2935_v27 = vadd.f32 %v663_v25, %v654_v8  ;;  %s653_s20 = scalar_lea.vmem %s3347_s3, %s2884_s25  ;;  %v1154_v40 = vstv %s658_s26  ;;  %v2424_v23 = vpack.c.bf16 %v1416_v19, %v1415_v18  ;;  %v1339_v25 = vld [vmem:[%s3312_s10 + $0x18] sm:$0xff]  ;;  %v1753_v18 = vld [vmem:[%s3315_s13 + $0x20] sm:$0xff]  ;;  %v1755_v19 = vld [vmem:[%s3315_s13 + $0x30] sm:$0xff] }
  0x42   : > { %2398 = vmatpush3.bf16.msra.mxu0 %v2397_v7  ;;  %v2962_v39 = vld [vmem:[%s653_s20] sm:$0xff]  ;;  %v1156_v44 = vstv %s2182_s21  ;;  %s3322_s20 = sand.u32 1, %s2681_s28   ;;  %s3200_s21 = sshll.u32 %s2816_s0, 7 }
  0x43   : > { %2305 = vmatprep.subr.mxu0 %v2694_v6  ;;  %s645_s24 = scalar_lea.vmem %s3344_s19, %s2884_s25  ;;  %v1155_v42 = vmul.f32 %v1154_v40, %v2962_v39 }
  0x44   : > { %v655_v14 = vld [vmem:[%s645_s24] sm:$0xff]  ;;  %s649_s7 = scalar_lea.vmem %s3348_s6, %s2884_s25  ;;  %s2184_s25 = sld [smem:[#allocation2 + $0x3]] }
  0x45   : > { %2303 = vmatmul.mubr.msk.f32.vlgmr.msra.gmra.mrb[0].mxu0 %vm676_vm1, %v654_v8  ;;  %v1157_v46 = vadd.f32 %v1156_v44, %v1155_v42  ;;  %s1956_s24 = sand.u32 1, %s2816_s0  }
  0x46   : > { %2307 = vmatprep.mubr.msk.f32.mxu0 %vm2693_vm0, %v2694_v6  ;;  %s3210_s6 = scalar_lea.sflag [#allocation7], %s1956_s24 }
 0x118   : > { %v746_v10 = vpop.f32.mrb[0].mxu0 }
 0x119   : > { %v747_v11 = vadd.f32 %v2186_v9, %v746_v10  ;;  %v2304_v12 = vpop.f32.mrb[1].mxu0 }
 0x11b   : > { %2306 = vmatpush3.xpose.msk.msra.mxu0 %vm752_vm2, %v747_v11 }
 0x11c   : > { %2399 = vmatprep.subr.bf16.mxu0 %v2692_v3 }
 0x11e   : > { %2308 = vmatmul.mubr.msk.f32.vlgmr.msra.gmra.mrb[2].mxu0 %vm752_vm2, %v750_v13 }
 0x11f   : > { %2401 = vmatpush3.bf16.msra.mxu0 %v2394_v4  ;;  %2318 = vmatprep.mubr.msk.f32.mxu0 %vm2693_vm0, %v2694_v6 }
 0x120   : > { %2402 = vmatprep.subr.bf16.mxu0 %v2692_v3 }
 0x123   : > { %2404 = vmatpush3.bf16.msra.mxu0 %v2397_v7 }
 0x124   : > { %2321 = vmatprep.subr.mxu0 %v2694_v6 }
 0x126   : > { %2319 = vmatmul.mubr.msk.f32.vlgmr.msra.gmra.mrb[4].mxu0 %vm676_vm1, %v655_v14 }
 0x127   : > { %2323 = vmatprep.mubr.msk.f32.mxu0 %vm2693_vm0, %v2694_v6 }
 0x1f1   : > { %v825_v15 = vpop.f32.mrb[2].mxu0 }
 0x1f2   : > { %v2309_v16 = vpop.f32.mrb[3].mxu0  ;;  %v826_v35 = vadd.f32 %v825_v15, %v751_v33  ;;  %v1413_v15 = vld [vmem:[%s3313_s11] sm:$0xff] }
 0x1f3   : > { %v1414_v16 = vld [vmem:[%s3313_s11 + $0x8] sm:$0xff] }
 0x1f4   : > { %vm829_vm3 = vcmp.eq.f32.partialorder %v826_v35, 0.0 }
 0x1f5   : > { %v2190_v41 = vsel %vm829_vm3, 1.0, %v2694_v6 }
 0x1f6   : > { %v991_v43 = vrot.slane %v2190_v41, %v990_v38 }
 0x1f8   : > { %v992_v48 = vadd.f32 %v2195_v45, %v991_v43  ;;  %v1569_v43 = vstv %s2183_s8  ;;  %v1571_v45 = vstv %s2184_s25  ;;  %s2697_s8 = smov [#allocation6]  }
 0x1f9   : > { %v901_v17 = vpop.f32.mrb[4].mxu0  ;;  %v1570_v44 = vmul.f32 %v1569_v43, %v2962_v39  ;;  %v1855_v43 = vld [vmem:[%s3316_s14 + $0xb0] sm:$0xff]  ;;  %s2567_s25 = sshll.u32 %s2697_s8, 4  ;;  %s2568_s25 = int_to_ptr.vmem [resolvable:$false] %s2567_s25 }
 0x1fa   : > { %v902_v20 = vadd.f32 %v2186_v9, %v901_v17  ;;  %v2320_v21 = vpop.f32.mrb[5].mxu0  ;;  %vm1159_vm6 = vcmp.gt.f32.partialorder %v992_v48, 0.0  ;;  %v2421_v17 = vpack.c.bf16 %v1414_v16, %v1413_v15  ;;  %v1756_v15 = vld [vmem:[%s3315_s13 + $0x38] sm:$0xff]  ;;  %s2569_s0 = scalar_lea.vmem %s2568_s25, 256 }
 0x1fb   : > { %v1337_v21 = vld [vmem:[%s3312_s10 + $0x8] sm:$0xff] }
 0x1fc   : > { %2322 = vmatpush3.xpose.msk.msra.mxu0 %vm752_vm2, %v902_v20  ;;  %v1336_v20 = vld [vmem:[%s3312_s10] sm:$0xff] }
 0x1fd   : > { %2405 = vmatprep.subr.bf16.mxu0 %v2692_v3  ;;  %v2415_v24 = vpack.c.bf16 %v1337_v21, %v1336_v20  ;;  %v2435_v20 = vpack.c.bf16 %v1755_v19, %v1753_v18  ;;  %v1849_v21 = vld [vmem:[%s3316_s14 + $0x80] sm:$0xff] }
 0x1ff   : > { %2324 = vmatmul.mubr.msk.f32.vlgmr.msra.gmra.mrb[6].mxu0 %vm752_vm2, %v750_v13 }
 0x200   : > { %2407 = vmatpush3.bf16.msra.mxu0 %v2406_v22  ;;  %2334 = vmatprep.mubr.msk.f32.mxu0 %vm2693_vm0, %v2694_v6  ;;  %v1338_v22 = vld [vmem:[%s3312_s10 + $0x10] sm:$0xff] }
 0x201   : > { %2408 = vmatprep.subr.bf16.mxu0 %v2692_v3 }
 0x204   : > { %2410 = vmatpush3.bf16.msra.mxu0 %v2409_v26  ;;  %v2418_v26 = vpack.c.bf16 %v1339_v25, %v1338_v22  ;;  %v1850_v22 = vld [vmem:[%s3316_s14 + $0x88] sm:$0xff] }
 0x205   : > { %2411 = vmatprep.subr.bf16.mxu0 %v2692_v3  ;;  %v1834_v25 = vld [vmem:[%s3316_s14 + $0x8] sm:$0xff] }
 0x207   : > { %2335 = vmatmul.mubr.msk.f32.vlgmr.msra.gmra.mrb[8].mxu0 %vm676_vm1, %v2935_v27 }
 0x208   : > { %2351 = vmatprep.mubr.msk.f32.mxu0 %vm2693_vm0, %v2694_v6  ;;  %2413 = vmatpush3.bf16.msra.mxu0 %v2412_v61 }
 0x209   : > { %2420 = vmatprep.subr.bf16.mxu0 %v2692_v3 }
 0x2d2   : > { %v2942_v28 = vpop.f32.mrb[6].mxu0 }
 0x2d3   : > { %v2325_v29 = vpop.f32.mrb[7].mxu0  ;;  %v975_v42 = vadd.f32 %v2942_v28, %v751_v33 }
 0x2d5   : > { %vm978_vm7 = vcmp.eq.f32.partialorder %v975_v42, 0.0  ;;  %v1838_v42 = vld [vmem:[%s3316_s14 + $0x28] sm:$0xff] }
 0x2da   : > { %v1070_v30 = vpop.f32.mrb[8].mxu0 }
 0x2db   : > { %1077 = vrot.lane.b32.xlu0 %v1070_v30, %s3324_s15  ;;  %v2336_v31 = vpop.f32.mrb[9].mxu0 }
 0x34d   : > { %v1078_v32 = vpop.permute.xlu0 %1077 }
 0x34e   : > { %2338 = vmatpush3.xpose.msk.msra.mxu1 %vm752_vm2, %v1078_v32 }
 0x34f   : > { %2342 = vmatprep.subr.mxu1 %v2694_v6 }
 0x351   : > { %2340 = vmatmul.mubr.msk.f32.vlgmr.msra.gmra.mrb[0].mxu1 %vm752_vm2, %v1070_v30 }
 0x352   : > { %2344 = vmatprep.mubr.msk.f32.mxu1 %vm2693_vm0, %v2694_v6 }
 0x424   : > { %v1149_v47 = vpop.f32.mrb[0].mxu1 }
 0x425   : > { %v1153_v49 = vmul.f32 0.25, %v1149_v47  ;;  %v2341_v50 = vpop.f32.mrb[1].mxu1 }
 0x427   : > { %v1158_v51 = vadd.f32 %v1157_v46, %v1153_v49  ;;  %v2194_v46 = vsel %vm978_vm7, 1.0, %v2694_v6 }
 0x428   : > { %v996_v48 = vrot.slane %v2194_v46, %v990_v38  ;;  %v1491_v38 = vld [vmem:[%s3314_s12 + $0x8] sm:$0xff] }
 0x429   : > { %v1160_v52 = vsel %vm1159_vm6, -1e+09, %v1158_v51 }
 0x42a   : > { %v1162_v53 = vsel %vm1161_vm5, %v1160_v52, -inf  ;;  %vm1574_vm8 = vcmp.gt.f32.partialorder %v996_v48, 0.0  ;;  %v1857_v48 = vld [vmem:[%s3316_s14 + $0xc0] sm:$0xff] }
 0x42b   : > { %1163 = vmax.xlane.f32.xlu0 %v1162_v53 }
 0x4b8   : > { %v1164_v54 = vpop.xlane.xlu0 %1163 }
 0x4b9   : > { %v1165_v55 = vsub.f32 %v1160_v52, %v1164_v54 }
 0x4bb   : > { %v1166_v56 = vmul.f32 1.442695, %v1165_v55 }
 0x4bd   : > { %2534 = vpow2.f32 %v1166_v56  ;;  %v2427_v56 = vpack.c.bf16 %v1491_v38, %v1490_v36  ;;  %v1844_v36 = vld [vmem:[%s3316_s14 + $0x58] sm:$0xff]  ;;  %v1861_v38 = vld [vmem:[%s3316_s14 + $0xe0] sm:$0xff] }
 0x4c7   : > { %v2535_v57 = vpop.eup %2534 }
 0x4c8   : > { %v1168_v58 = vsel %vm1161_vm5, %v2535_v57, 0.0 }
 0x4c9   : > { %1169 = vadd.xlane.f32.xlu1 %v1168_v58 }
 0x4da   : > { %1173 = vrot.lane.b32.xlu1 %v1070_v30, %s2696_s5  ;;  %s2983_s5 = sshll.u32 %s3322_s20, 3 }
 0x4db   : > { %s3323_s26 = scalar_lea.vmem [#allocation6], %s2983_s5  ;;  %s637_s15 = scalar_lea.vmem [#allocation8], %s2983_s5 }
 0x4dc   : > { %s3350_s3 = scalar_lea.vmem [#allocation6], %s2983_s5 }
 0x4dd   : > { %s1988_s4 = sshll.u32 %s3350_s3, 4  ;;  %s1989_s4 = int_to_ptr.vmem [resolvable:$true] %s1988_s4 }
 0x4de   : > { %p2570_p13 = scmp.lt.s32.totalorder %s1989_s4, %s2568_s25 }
 0x556   : > { %v1170_v62 = vpop.xlane.xlu1 %1169 }
 0x557   : > { %2536 = vrcp.f32 %v1170_v62 }
 0x55a   : > { %v1174_v63 = vpop.permute.xlu1 %1173 }
 0x55b   : > { %2343 = vmatpush3.msra.mxu1 %v1174_v63 }
 0x55c   : > { %2414 = vmatprep.subr.bf16.mxu1 %v2692_v3 }
 0x561   : > { %v2537_v0 = vpop.eup %2536 }
 0x562   : > { %v1172_v1 = vmul.f32 %v2537_v0, %v2535_v57 }
 0x564   : > { %2345 = vmatmul.mubr.msk.f32.vlgmr.msra.gmra.mrb[2].mxu1 %vm1161_vm5, %v1172_v1  ;;  %1949 = vst.msk [vmem:[%s3323_s26] sm:$0xff] %vm1161_vm5, %v1172_v1  ;;  %s3206_s26 = scalar_lea.hbm %s3319_s17, %s3200_s21 }
 0x565   : > { %2362 = vmatprep.mubr.msk.f32.mxu1 %vm2693_vm0, %v2694_v6  ;;  %2416 = vmatpush3.bf16.msra.mxu1 %v2415_v24  ;;  %v2437_v24 = vpack.c.bf16 %v1850_v22, %v1849_v21 }
 0x566   : > { %2417 = vmatprep.subr.bf16.mxu1 %v2692_v3 }
 0x569   : > { %2419 = vmatpush3.bf16.msra.mxu1 %v2418_v26  ;;  %v1851_v26 = vld [vmem:[%s3316_s14 + $0x90] sm:$0xff] }
 0x56a   : > { %2376 = vmatprep.subr.mxu1 %v2694_v6 }
 0x637   : > { %v1245_v2 = vpop.f32.mrb[2].mxu1 }
 0x638   : > { %v2346_v4 = vpop.f32.mrb[3].mxu1  ;;  %2352 = vmatmul.mubr.msk.f32.vlgmr.msra.gmra.mrb[10].mxu0 %vm752_vm2, %v1245_v2 }
 0x639   : > { %2373 = vmatprep.mubr.msk.f32.mxu0 %vm2693_vm0, %v2694_v6  ;;  %2422 = vmatpush3.bf16.msra.mxu0 %v2421_v17 }
 0x63a   : > { %2423 = vmatprep.subr.bf16.mxu0 %v2692_v3 }
 0x63d   : > { %2425 = vmatpush3.bf16.msra.mxu0 %v2424_v23  ;;  %v1833_v23 = vld [vmem:[%s3316_s14] sm:$0xff] }
 0x63e   : > { %2381 = vmatprep.subr.mxu0 %v2694_v6 }
 0x70b   : > { %v1318_v5 = vpop.f32.mrb[10].mxu0 }
 0x70c   : > { %v1319_v7 = vadd.f32 %v1318_v5, %v2935_v27  ;;  %v2353_v8 = vpop.f32.mrb[11].mxu0  ;;  %v656_v27 = vld [vmem:[%s649_s7] sm:$0xff]  ;;  %s2563_s7 = scalar_lea.vmem %s1989_s4, 128 }
 0x70d   : > { %2374 = vmatmul.mubr.msk.f32.vlgmr.msra.gmra.mrb[12].mxu0 %vm676_vm1, %v656_v27  ;;  %v1852_v27 = vld [vmem:[%s3316_s14 + $0x98] sm:$0xff]  ;;  %p2564_p10 = scmp.ne.s32.totalorder %s1989_s4, %s2563_s7  ;;  %p2571_p0 = scmp.lt.s32.totalorder %s2569_s0, %s2563_s7 }
 0x70e   : > { %v1322_v9 = vsel %vm676_vm1, %v1319_v7, 0.0  ;;  %2383 = vmatprep.mubr.msk.f32.mxu0 %vm2693_vm0, %v2694_v6 }
 0x70f   : > { %1323 = vadd.xlane.f32.xlu1 %v1322_v9  ;;  %p2565_p11 = pnand %p2564_p10, %p2835_p5  ;;  %p2572_p1 = por %p2571_p0, %p2570_p13 }
 0x711   : > { %p2566_p12 = pneg %p2565_p11 }
 0x713   : > { %p2573_p2 = pnand %p2572_p1, %p2566_p12 }
 0x79c   : > { %v1324_v10 = vpop.xlane.xlu1 %1323 }
 0x79d   : > { %v1326_v11 = vmul.f32 0.03125, %v1324_v10  ;;  %v1752_v10 = vld [vmem:[%s3315_s13 + $0x18] sm:$0xff] }
 0x79f   : > { %v1327_v12 = vsub.f32 %v1319_v7, %v1326_v11  ;;  %v1749_v11 = vld [vmem:[%s3315_s13] sm:$0xff] }
 0x7a1   : > { %v1328_v13 = vmul.f32 %v1327_v12, %v1327_v12 }
 0x7a3   : > { %v1329_v14 = vsel %vm676_vm1, %v1328_v13, 0.0  ;;  %v1751_v13 = vld [vmem:[%s3315_s13 + $0x10] sm:$0xff] }
 0x7a4   : > { %1330 = vadd.xlane.f32.xlu0 %v1329_v14  ;;  %v1754_v14 = vld [vmem:[%s3315_s13 + $0x28] sm:$0xff]  ;;  %v2431_v16 = vpack.c.bf16 %v1751_v13, %v1749_v11 }
 0x7a5   : > { %v2433_v17 = vpack.c.bf16 %v1756_v15, %v1754_v14 }
 0x7e0   : > { %v1486_v35 = vpop.f32.mrb[12].mxu0 }
 0x7e1   : > { %v2375_v37 = vpop.f32.mrb[13].mxu0 }
 0x831   : > { %v1331_v29 = vpop.xlane.xlu0 %1330 }
 0x832   : > { %v1332_v30 = vmul.f32 0.03125, %v1331_v29  ;;  %v2439_v29 = vpack.c.bf16 %v1834_v25, %v1833_v23 }
 0x834   : > { %v1333_v31 = vadd.f32 1e-05, %v1332_v30  ;;  %v2441_v30 = vpack.c.bf16 %v1852_v27, %v1851_v26 }
 0x836   : > { %2538 = vrsqrt.f32 %v1333_v31  ;;  %v1835_v31 = vld [vmem:[%s3316_s14 + $0x10] sm:$0xff] }
 0x840   : > { %v2539_v32 = vpop.eup %2538 }
 0x841   : > { %v1335_v34 = vmul.f32 %v2539_v32, %v1327_v12  ;;  %v1836_v32 = vld [vmem:[%s3316_s14 + $0x18] sm:$0xff] }
 0x842   : > { %v2443_v37 = vpack.c.bf16 %v1836_v32, %v1835_v31 }
 0x843   : > { %2363 = vmatmul.mubr.msk.f32.vlgmr.msra.gmra.mrb[4].mxu1 %vm676_vm1, %v1335_v34 }
 0x844   : > { %2378 = vmatprep.mubr.msk.f32.mxu1 %vm2693_vm0, %v2694_v6  ;;  %2377 = vmatpush3.xpose.msk.msra.mxu1 %vm752_vm2, %v1486_v35 }
 0x845   : > { %2426 = vmatprep.subr.bf16.mxu1 %v2692_v3  ;;  %v1572_v3 = vadd.f32 %v1571_v45, %v1570_v44  ;;  %v1856_v44 = vld [vmem:[%s3316_s14 + $0xb8] sm:$0xff] }
 0x846   : > { %v2449_v46 = vpack.c.bf16 %v1856_v44, %v1855_v43 }
 0x916   : > { %v1409_v40 = vpop.f32.mrb[4].mxu1 }
 0x917   : > { %v2364_v41 = vpop.f32.mrb[5].mxu1  ;;  %2379 = vmatmul.mubr.msk.f32.vlgmr.msra.gmra.mrb[6].mxu1 %vm752_vm2, %v1409_v40 }
 0x918   : > { %2390 = vmatprep.mubr.msk.f32.mxu1 %vm2693_vm0, %v2694_v6  ;;  %2428 = vmatpush3.bf16.msra.mxu1 %v2427_v56  ;;  %v1837_v41 = vld [vmem:[%s3316_s14 + $0x20] sm:$0xff]  ;;  %v1862_v56 = vld [vmem:[%s3316_s14 + $0xe8] sm:$0xff] }
 0x919   : > { %2438 = vmatprep.subr.bf16.mxu1 %v2437_v24  ;;  %v2447_v45 = vpack.c.bf16 %v1838_v42, %v1837_v41 }
 0x9ea   : > { %v1564_v47 = vpop.f32.mrb[6].mxu1 }
 0x9eb   : > { %v1568_v49 = vmul.f32 0.25, %v1564_v47  ;;  %v2380_v50 = vpop.f32.mrb[7].mxu1  ;;  %v1840_v47 = vld [vmem:[%s3316_s14 + $0x38] sm:$0xff] }
 0x9ed   : > { %v1573_v51 = vadd.f32 %v1572_v3, %v1568_v49  ;;  %v1839_v3 = vld [vmem:[%s3316_s14 + $0x30] sm:$0xff]  ;;  %v1858_v49 = vld [vmem:[%s3316_s14 + $0xc8] sm:$0xff] }
 0x9ee   : > { %v2451_v50 = vpack.c.bf16 %v1840_v47, %v1839_v3 }
 0x9ef   : > { %v1575_v52 = vsel %vm1574_vm8, -1e+09, %v1573_v51  ;;  %v2453_v51 = vpack.c.bf16 %v1858_v49, %v1857_v48 }
 0x9f0   : > { %v1576_v53 = vsel %vm1161_vm5, %v1575_v52, -inf }
 0x9f1   : > { %1577 = vmax.xlane.f32.xlu0 %v1576_v53  ;;  %v1842_v53 = vld [vmem:[%s3316_s14 + $0x48] sm:$0xff] }
 0xa7e   : > { %v1578_v28 = vpop.xlane.xlu0 %1577 }
 0xa7f   : > { %v1579_v33 = vsub.f32 %v1575_v52, %v1578_v28  ;;  %v1841_v52 = vld [vmem:[%s3316_s14 + $0x40] sm:$0xff]  ;;  %v1859_v28 = vld [vmem:[%s3316_s14 + $0xd0] sm:$0xff] }
 0xa81   : > { %v1580_v54 = vmul.f32 1.442695, %v1579_v33  ;;  %v1860_v33 = vld [vmem:[%s3316_s14 + $0xd8] sm:$0xff] }
 0xa83   : > { %2540 = vpow2.f32 %v1580_v54  ;;  %v2455_v54 = vpack.c.bf16 %v1842_v53, %v1841_v52 }
 0xa8d   : > { %v2541_v39 = vpop.eup %2540 }
 0xa8e   : > { %v1582_v55 = vsel %vm1161_vm5, %v2541_v39, 0.0 }
 0xa8f   : > { %1583 = vadd.xlane.f32.xlu0 %v1582_v55  ;;  %v1843_v55 = vld [vmem:[%s3316_s14 + $0x50] sm:$0xff] }
 0xaa5   : > { %1587 = vrot.lane.b32.xlu0 %v1486_v35, %s3349_s22  ;;  %v1854_v35 = vld [vmem:[%s3316_s14 + $0xa8] sm:$0xff] }
 0xb1c   : > { %v1584_v57 = vpop.xlane.xlu0 %1583 }
 0xb1d   : > { %2542 = vrcp.f32 %v1584_v57  ;;  %v2459_v57 = vpack.c.bf16 %v1844_v36, %v1843_v55 }
 0xb20   : > { %v1588_v58 = vpop.permute.xlu0 %1587 }
 0xb21   : > { %2382 = vmatpush3.msra.mxu0 %v1588_v58  ;;  %v2461_v58 = vpack.c.bf16 %v1862_v56, %v1861_v38 }
 0xb27   : > { %v2543_v59 = vpop.eup %2542 }
 0xb28   : > { %v1586_v60 = vmul.f32 %v2543_v59, %v2541_v39  ;;  %v2457_v39 = vpack.c.bf16 %v1860_v33, %v1859_v28  ;;  %v1845_v59 = vld [vmem:[%s3316_s14 + $0x60] sm:$0xff] }
 0xb2a   : > { %2384 = vmatmul.mubr.msk.f32.vlgmr.msra.gmra.mrb[14].mxu0 %vm1161_vm5, %v1586_v60  ;;  %1950 = vst.msk [vmem:[%s637_s15] sm:$0xff] %vm1161_vm5, %v1586_v60  ;;  %v1846_v60 = vld [vmem:[%s3316_s14 + $0x68] sm:$0xff] }
 0xb2b   : > { %1824 = vmatprep.mubr.f32.mxu0 %v2694_v6  ;;  %v1750_v6 = vld [vmem:[%s3315_s13 + $0x8] sm:$0xff] }
 0xb2c   : > { %v2429_v12 = vpack.c.bf16 %v1752_v10, %v1750_v6  ;;  %v1848_v6 = vld [vmem:[%s3316_s14 + $0x78] sm:$0xff] }
 0xb2e   : > { %2430 = vmatprep.subr.bf16.mxu0 %v2429_v12 }
 0xb2f   : > { %2432 = vmatpush1.bf16.msra.mxu0 %v2431_v16 }
 0xb30   : > { %2434 = vmatprep.subr.bf16.mxu0 %v2433_v17 }
 0xb33   : > { %2436 = vmatpush1.bf16.msra.mxu0 %v2435_v20 }
 0xbfd   : > { %v1659_v61 = vpop.f32.mrb[14].mxu0 }
 0xbfe   : > { %v2385_v62 = vpop.f32.mrb[15].mxu0  ;;  %2391 = vmatmul.mubr.msk.f32.vlgmr.msra.gmra.mrb[8].mxu1 %vm752_vm2, %v1659_v61  ;;  %v2463_v61 = vpack.c.bf16 %v1846_v60, %v1845_v59 }
 0xbff   : > { %2440 = vmatpush3.bf16.msra.mxu1 %v2439_v29 }
 0xc00   : > { %2442 = vmatprep.subr.bf16.mxu1 %v2441_v30 }
 0xc03   : > { %2444 = vmatpush3.bf16.msra.mxu1 %v2443_v37 }
 0xcd1   : > { %v1732_v63 = vpop.f32.mrb[8].mxu1 }
 0xcd2   : > { %v1733_v0 = vadd.f32 %v1732_v63, %v1335_v34  ;;  %v2392_v1 = vpop.f32.mrb[9].mxu1  ;;  %v1853_v34 = vld [vmem:[%s3316_s14 + $0xa0] sm:$0xff] }
 0xcd3   : > { %v2445_v40 = vpack.c.bf16 %v1854_v35, %v1853_v34 }
 0xcd4   : > { %v1736_v2 = vsel %vm676_vm1, %v1733_v0, 0.0 }
 0xcd5   : > { %1737 = vadd.xlane.f32.xlu1 %v1736_v2  ;;  %2446 = vmatprep.subr.bf16.mxu1 %v2445_v40 }
 0xcd6   : > { %2448 = vmatpush3.bf16.msra.mxu1 %v2447_v45 }
 0xcd7   : > { %2450 = vmatprep.subr.bf16.mxu1 %v2449_v46 }
 0xcda   : > { %2452 = vmatpush3.bf16.msra.mxu1 %v2451_v50 }
 0xcdb   : > { %2454 = vmatprep.subr.bf16.mxu1 %v2453_v51 }
 0xcde   : > { %2456 = vmatpush3.bf16.msra.mxu1 %v2455_v54 }
 0xcdf   : > { %2458 = vmatprep.subr.bf16.mxu1 %v2457_v39 }
 0xce2   : > { %2460 = vmatpush3.bf16.msra.mxu1 %v2459_v57 }
 0xce3   : > { %2462 = vmatprep.subr.bf16.mxu1 %v2461_v58 }
 0xce6   : > { %2464 = vmatpush3.bf16.msra.mxu1 %v2463_v61 }
 0xd62   : > { %v1738_v4 = vpop.xlane.xlu1 %1737 }
 0xd63   : > { %v1739_v5 = vmul.f32 0.03125, %v1738_v4  ;;  %v1863_v4 = vld [vmem:[%s3316_s14 + $0xf0] sm:$0xff] }
 0xd65   : > { %v3065_v7 = vsub.f32 %v1733_v0, %v1739_v5  ;;  %v1864_v5 = vld [vmem:[%s3316_s14 + $0xf8] sm:$0xff] }
 0xd67   : > { %v1741_v8 = vmul.f32 %v3065_v7, %v3065_v7 }
 0xd69   : > { %v1742_v9 = vsel %vm676_vm1, %v1741_v8, 0.0  ;;  %v2465_v8 = vpack.c.bf16 %v1864_v5, %v1863_v4 }
 0xd6a   : > { %1743 = vadd.xlane.f32.xlu1 %v1742_v9  ;;  %v1847_v9 = vld [vmem:[%s3316_s14 + $0x70] sm:$0xff] }
 0xd6b   : > { %2466 = vmatprep.subr.bf16.mxu1 %v2465_v8 }
 0xdf7   : > { %v1744_v62 = vpop.xlane.xlu1 %1743 }
 0xdf8   : > { %v1745_v63 = vmul.f32 0.03125, %v1744_v62 }
 0xdfa   : > { %v1746_v0 = vadd.f32 1e-05, %v1745_v63 }
 0xdfc   : > { %2544 = vrsqrt.f32 %v1746_v0 }
 0xe06   : > { %v2545_v1 = vpop.eup %2544 }
 0xe07   : > { %v1748_v2 = vmul.f32 %v2545_v1, %v3065_v7  ;;  %v2467_v7 = vpack.c.bf16 %v1848_v6, %v1847_v9 }
 0xe09   : > { %2207 = vmatmul.mubr.msk.f32.vlgmr.msra.gmra.mrb[16].mxu0 %vm676_vm1, %v1748_v2  ;;  %2468 = vmatpush3.bf16.msra.mxu1 %v2467_v7 }
 0xedc   : > { %v1826_v10 = vpop.f32.mrb[16].mxu0 }
 0xedd   : > { %v1828_v11 = vpop.f32.mrb[17].mxu0  ;;  %v1831_v13 = vmax.f32 %v1826_v10, 0.0 }
 0xede   : > { %v1832_v12 = vmax.f32 %v1828_v11, 0.0 }
 0xee0   : > { %1929 = vmatprep.mubr.f32.mxu1 %v1832_v12 }
 0xee1   : > { %1930 = vmatmul.mubr.f32.vlgmr.msra.gmra.mrb[10].mxu1 %v1831_v13 }
 0xfb4   : > { %v2291_v14 = vpop.f32.mrb[10].mxu1 }
 0xfb5   : > { %v2292_v15 = vpop.f32.mrb[11].mxu1 }
 0xfb6   : > { %v2293_v16 = vadd.f32 %v2292_v15, %v2291_v14 }
 0xfb8   : > { %v1932_v17 = vadd.f32 %v2293_v16, %v1748_v2 }
 0xfba   : > { %v1935_v18 = vsel %vm676_vm1, %v1932_v17, 0.0 }
 0xfbb   : > { %1936 = vadd.xlane.f32.xlu1 %v1935_v18 }
0x1048   : > { %v1937_v19 = vpop.xlane.xlu1 %1936 }
0x1049   : > { %v1938_v20 = vmul.f32 0.03125, %v1937_v19 }
0x104b   : > { %v3193_v21 = vsub.f32 %v1932_v17, %v1938_v20 }
0x104d   : > { %v1940_v22 = vmul.f32 %v3193_v21, %v3193_v21 }
0x104f   : > { %v1941_v23 = vsel %vm676_vm1, %v1940_v22, 0.0 }
0x1050   : > { %1942 = vadd.xlane.f32.xlu0 %v1941_v23 }
0x1051   : > { %2576 = shalt.err (!%p2573_p2)
}
0x1052   : > { %s2577_s22 = scalar_lea.hbm %s3206_s26, 128  ;;  %s2581_s20 = scalar_lea.hbm %s3319_s17, 256 }
0x1053   : > { %p2578_p3 = scmp.ne.s32.totalorder %s3206_s26, %s2577_s22  ;;  %p2582_p8 = scmp.lt.u32.totalorder %s3206_s26, %s3319_s17 }
0x1054   : > { %p2583_p9 = scmp.lt.u32.totalorder %s2581_s20, %s2577_s22  ;;  %p2585_p11 = scmp.lt.u32.totalorder %s2577_s22, %s3206_s26 }
0x1055   : > { %p2579_p4 = pnand %p2578_p3, %p2835_p5 }
0x1056   : > { %p2584_p10 = por %p2583_p9, %p2582_p8 }
0x1057   : > { %p2580_p7 = pneg %p2579_p4 }
0x1058   : > { %p2586_p12 = por %p2585_p11, %p2584_p10 }
0x105a   : > { %p2587_p13 = pnand %p2586_p12, %p2580_p7 }
0x105c   : > { %2590 = shalt.err (!%p2587_p13)
}
0x105d   : > { %2474 = dma.vmem_to_hbm [thread:$0]  (%p2835_p5), %s1989_s4, 128, %s3206_s26, %s3210_s6  }
0x105e   : > { %s2001_s7 = sshll.u32 %s637_s15, 4  ;;  %s1999_s24 = scalar_lea.hbm %s3320_s18, %s3200_s21  ;;  %s2002_s7 = int_to_ptr.vmem [resolvable:$true] %s2001_s7 }
0x105f   : > { %s2591_s19 = scalar_lea.vmem %s2002_s7, 128  ;;  %s2698_s22 = smov [#allocation8]  }
0x1060   : > { %p2592_p0 = scmp.ne.s32.totalorder %s2002_s7, %s2591_s19  ;;  %s2595_s20 = sshll.u32 %s2698_s22, 4  ;;  %s2596_s20 = int_to_ptr.vmem [resolvable:$false] %s2595_s20 }
0x1061   : > { %s2597_s3 = scalar_lea.vmem %s2596_s20, 256  ;;  %p2598_p3 = scmp.lt.s32.totalorder %s2002_s7, %s2596_s20 }
0x1062   : > { %p2593_p1 = pnand %p2592_p0, %p2835_p5  ;;  %p2599_p4 = scmp.lt.s32.totalorder %s2597_s3, %s2591_s19 }
0x1064   : > { %p2594_p2 = pneg %p2593_p1  ;;  %p2600_p7 = por %p2599_p4, %p2598_p3 }
0x1066   : > { %p2601_p8 = pnand %p2600_p7, %p2594_p2 }
0x1068   : > { %2604 = shalt.err (!%p2601_p8)
}
0x1069   : > { %s2605_s15 = scalar_lea.hbm %s1999_s24, 128  ;;  %s2609_s8 = scalar_lea.hbm %s3320_s18, 256 }
0x106a   : > { %p2606_p9 = scmp.ne.s32.totalorder %s1999_s24, %s2605_s15  ;;  %p2610_p12 = scmp.lt.u32.totalorder %s1999_s24, %s3320_s18 }
0x106b   : > { %p2611_p13 = scmp.lt.u32.totalorder %s2609_s8, %s2605_s15  ;;  %p2613_p1 = scmp.lt.u32.totalorder %s2605_s15, %s1999_s24 }
0x106c   : > { %p2607_p10 = pnand %p2606_p9, %p2835_p5 }
0x106d   : > { %p2612_p0 = por %p2611_p13, %p2610_p12 }
0x106e   : > { %p2608_p11 = pneg %p2607_p10 }
0x106f   : > { %p2614_p3 = por %p2613_p1, %p2612_p0 }
0x1071   : > { %p2615_p2 = pnand %p2614_p3, %p2608_p11 }
0x1073   : > { %2618 = shalt.err (!%p2615_p2)
}
0x1074   : > { %2475 = dma.vmem_to_hbm [thread:$0]  (%p2835_p5), %s2002_s7, 128, %s1999_s24, %s3210_s6  }
0x1075   : > { %s623_s19 = scalar_lea.vmem [#allocation5], %s2983_s5  ;;  %s3255_s15 = scalar_lea.hbm %s3318_s16, %s3200_s21 }
0x1076   : > { %s1975_s22 = sshll.u32 %s623_s19, 4  ;;  %s3351_s6 = sand.u32 1, %s2681_s28   ;;  %s3257_s22 = int_to_ptr.vmem [resolvable:$true] %s1975_s22 }
0x1077   : > { %s1952_s7 = scalar_lea.sflag [#allocation3], %s3351_s6  ;;  %s2619_s24 = scalar_lea.vmem %s3257_s22, 128 }
0x1078   : > { %p2620_p4 = scmp.ne.s32.totalorder %s3257_s22, %s2619_s24  ;;  %s2699_s5 = smov [#allocation5]  }
0x1079   : > { %s2623_s26 = sshll.u32 %s2699_s5, 4  ;;  %s2624_s26 = int_to_ptr.vmem [resolvable:$false] %s2623_s26 }
0x107a   : > { %p2621_p7 = pnand %p2620_p4, %p2835_p5  ;;  %s2625_s4 = scalar_lea.vmem %s2624_s26, 256 }
0x107b   : > { %p2626_p9 = scmp.lt.s32.totalorder %s3257_s22, %s2624_s26  ;;  %p2627_p10 = scmp.lt.s32.totalorder %s2625_s4, %s2619_s24 }
0x107c   : > { %p2622_p8 = pneg %p2621_p7 }
0x107d   : > { %p2628_p11 = por %p2627_p10, %p2626_p9 }
0x107f   : > { %p2629_p12 = pnand %p2628_p11, %p2622_p8 }
0x10dd   : > { %v1943_v24 = vpop.xlane.xlu0 %1942 }
0x10de   : > { %v1944_v25 = vmul.f32 0.03125, %v1943_v24 }
0x10e0   : > { %v1945_v26 = vadd.f32 1e-05, %v1944_v25 }
0x10e2   : > { %2546 = vrsqrt.f32 %v1945_v26 }
0x10ec   : > { %v2547_v27 = vpop.eup %2546 }
0x10ed   : > { %v1947_v29 = vmul.f32 %v2547_v27, %v3193_v21 }
0x10ef   : > { %1948 = vst.msk [vmem:[%s623_s19] sm:$0xff] %vm676_vm1, %v1947_v29 }
0x10f0   : > { %2632 = shalt.err (!%p2629_p12)
}
0x10f1   : > { %s2633_s21 = scalar_lea.hbm %s3255_s15, 128  ;;  %s2637_s0 = scalar_lea.hbm %s3318_s16, 256 }
0x10f2   : > { %p2634_p13 = scmp.ne.s32.totalorder %s3255_s15, %s2633_s21  ;;  %p2638_p3 = scmp.lt.u32.totalorder %s3255_s15, %s3318_s16 }
0x10f3   : > { %p2639_p2 = scmp.lt.u32.totalorder %s2637_s0, %s2633_s21  ;;  %p2641_p7 = scmp.lt.u32.totalorder %s2633_s21, %s3255_s15 }
0x10f4   : > { %p2635_p0 = pnand %p2634_p13, %p2835_p5 }
0x10f5   : > { %p2640_p4 = por %p2639_p2, %p2638_p3 }
0x10f6   : > { %p2636_p1 = pneg %p2635_p0 }
0x10f7   : > { %p2642_p8 = por %p2641_p7, %p2640_p4 }
0x10f9   : > { %p2643_p9 = pnand %p2642_p8, %p2636_p1 }
0x10fb   : > { %2646 = shalt.err (!%p2643_p9)
}
0x10fc   : > { %2473 = dma.vmem_to_hbm [thread:$0]  (%p2835_p5), %s3257_s22, 128, %s3255_s15, %s1952_s7  }
0x10fd PF: > { %p2495_p10 = scmp.ge.s32.totalorder %s2689_s30, 2  ;;  %s2013_s3 = sand.u32 1, %s2677_s27  }
0x10fe   : > { %s2014_s6 = scalar_lea.sflag [#allocation3], %s2013_s3 }
0x10ff   : > { %p2484_p11 = pnand %p2495_p10, %p2839_p6 }
0x1101   : > { %2668 = dma.done.wait (!%p2484_p11), %s2014_s6, 128  }
0x1102   : > { %2670 = vsyncadd (!%p2484_p11), %s2014_s6, 4294967168  ;;  %s3352_s24 = sadd.s32 4294967294, %s2689_s30  }
0x1103   : > { %s2022_s5 = sand.u32 1, %s3352_s24  }
0x1104   : > { %s2023_s26 = scalar_lea.sflag [#allocation7], %s2022_s5 }
0x1105   : > { %2672 = dma.done.wait (!%p2484_p11), %s2023_s26, 256  }
0x1106   : > { %2674 = vsyncadd (!%p2484_p11), %s2023_s26, 4294967040  ;;  %s3353_s2 = sld [smem:[#allocation12_spill]]  ;;  %p33_p5 = scmp.ge.s32.totalorder %s2820_s1, 4  }
0x1107   : > { %s3354_s27 = smov %s2681_s28  ;;  %s3355_s28 = smov %s2685_s29 }
0x1108   : > { %s3357_s30 = smov %s2820_s1  ;;  %35 = sbr.rel (!%p33_p5) target bundleno = 17 (0x11), region = 165 }
0x110c   : > { %s3356_s29 = smov %s3353_s2 }
0x110f   :  { %2037 = vsyncpa [#allocation3], 1 }
0x1110   :  { %2039 = vsyncpa [#allocation3 + $0x1], 1 }
0x1111   :  { %2040 = vsyncpa [#allocation7], 1 }
0x1112   :  { %2042 = vsyncpa [#allocation7 + $0x1], 1 }
0x1113   :  { %2043 = vsyncpa [#allocation4], 1 }
0x1114   :  { %2045 = vsyncpa [#allocation4 + $0x1], 1 }

</bundles_post_ra>
